<compile_context>
chip_gen: v7x
topology: tpu7x:2x2x1
jax: 0.10.0
libtpu: 0.0.40
codegen_flags: <defaults>
</compile_context>

<pallas_src>
import math
import functools

import jax
import jax.numpy as jnp
from jax.experimental import pallas as pl
from jax.experimental.pallas import tpu as pltpu


_VMEM_BUDGET = 64 << 20  # conservative per-TensorCore budget valid on v5e/v6e/v7x


def _res_layer_kernel(x_ref, w1t_ref, b1_ref, w2t_ref, b2_ref, o_ref):
    """Fused block: out = relu( relu(x @ W1t + b1) @ W2t + b2 + x ).

    x_ref:  (TB, size)   f32
    w*_ref: (size, size) bf16, pre-transposed to (in, out)
    b*_ref: (1, size)    f32
    o_ref:  (TB, size)   f32
    """
    x = x_ref[...]                                   # f32, kept for the residual add
    xb = x.astype(jnp.bfloat16)                      # bf16 MXU operand

    # l_1 + ReLU (MXU bf16 x bf16 -> f32 accumulate)
    h = jnp.dot(xb, w1t_ref[...], preferred_element_type=jnp.float32)
    h = jnp.maximum(h + b1_ref[...], 0.0)

    # l_2 + residual add + ReLU
    y = jnp.dot(h.astype(jnp.bfloat16), w2t_ref[...],
                preferred_element_type=jnp.float32)
    y = jnp.maximum(y + b2_ref[...] + x, 0.0)

    o_ref[...] = y.astype(o_ref.dtype)


def _resident_bytes(size):
    # single-buffered bf16 weights + f32 biases (biases pad up to (8,128) tiles in VMEM)
    return 2 * size * size * 2 + 2 * 8 * max(size, 128) * 4


def _choose_block_b(B, size, vmem_budget=_VMEM_BUDGET):
    """Largest batch tile (multiple of 8, preferably dividing B) that fits the VMEM budget."""
    avail = max(vmem_budget - _resident_bytes(size), 2 << 20)
    # double-buffered f32 activation in + out blocks: 4 buffers * TB * size * 4 bytes
    cap = max((avail // (16 * size)) // 8 * 8, 8)
    tb = min(B, cap)
    if B >= 2 * 512:
        # v7x megacore: keep >=2 grid steps when each half-batch tile is still large
        half = max((-(-B // 2)) // 8 * 8, 8)
        tb = min(tb, half)
    tb = max(tb // 8 * 8, 8)
    # Prefer a tile that divides B exactly so the last block store stays unmasked.
    t = tb
    while t > 8 and B % t != 0:
        t -= 8
    if t >= 8 and B % t == 0:
        tb = t
    return tb


def res_layer_forward(x, w1t, b1, w2t, b2, *, block_b=None, vmem_budget=_VMEM_BUDGET):
    """Fused res_layer forward.

    x: (B, size) f32 (its buffer is aliased to the output; donate it at the jit boundary).
    w1t/w2t: (size, size) bf16 in (in, out) layout.  b1/b2: (1, size) f32.
    `size` should be a multiple of 128 for lane-dense tiles; multiples of 256 fully occupy
    the 2x256^2 MXU on v6e/v7x (128 is already native on v5e's 4x128^2 MXU).
    Weights/biases are VMEM-resident (constant index_map, single-buffered); activations
    stream through VMEM in (TB, size) blocks with software pipelining over the batch grid.
    """
    B, size = x.shape
    tb = block_b if block_b is not None else _choose_block_b(B, size, vmem_budget)
    tb = min(tb, B)
    grid = (pl.cdiv(B, tb),)

    act_spec = pl.BlockSpec((tb, size), lambda i: (i, 0))            # streamed over batch
    # Constant block index -> fetched once; Buffered(1) halves their VMEM footprint.
    w_spec = pl.BlockSpec((size, size), lambda i: (0, 0), pipeline_mode=pl.Buffered(1))
    b_spec = pl.BlockSpec((1, size), lambda i: (0, 0), pipeline_mode=pl.Buffered(1))

    needed = _resident_bytes(size) + 4 * tb * size * 4               # weights + act in/out
    vmem_limit = int(min(max(needed * 5 // 4 + (1 << 20), 16 << 20), 64 << 20))

    cost = pl.CostEstimate(
        flops=4 * B * size * size,                                   # two (B,size)x(size,size) matmuls
        bytes_accessed=2 * B * size * 4 + 2 * size * size * 2 + 2 * size * 4,
        transcendentals=0,
    )

    return pl.pallas_call(
        _res_layer_kernel,
        out_shape=jax.ShapeDtypeStruct((B, size), x.dtype),
        grid=grid,
        in_specs=[act_spec, w_spec, b_spec, w_spec, b_spec],
        out_specs=act_spec,
        input_output_aliases={0: 0},                                 # out reuses x's buffer
        cost_estimate=cost,
        compiler_params=pltpu.CompilerParams(
            dimension_semantics=("parallel",),
            vmem_limit_bytes=vmem_limit,
        ),
    )(x, w1t, b1, w2t, b2)


def init_params(key, size):
    """Mirrors init_weights(): xavier_normal_ weights, zero biases.

    Weights are created directly in the (in, out) transposed layout (for a square
    xavier-normal matrix the transposed layout has an identical distribution) and stored
    as bf16; biases as (1, size) f32.
    """
    k1, k2 = jax.random.split(key)
    std = math.sqrt(2.0 / (size + size))             # xavier normal, gain = 1
    w1t = (std * jax.random.normal(k1, (size, size), dtype=jnp.float32)).astype(jnp.bfloat16)
    w2t = (std * jax.random.normal(k2, (size, size), dtype=jnp.float32)).astype(jnp.bfloat16)
    b1 = jnp.zeros((1, size), dtype=jnp.float32)
    b2 = jnp.zeros((1, size), dtype=jnp.float32)
    return w1t, b1, w2t, b2


def reference_forward(x, w1t, b1, w2t, b2):
    """Pure-JAX reference with the same bf16-operand / f32-accumulate math as the kernel."""
    h = jnp.dot(x.astype(jnp.bfloat16), w1t, preferred_element_type=jnp.float32) + b1
    h = jnp.maximum(h, 0.0)
    y = jnp.dot(h.astype(jnp.bfloat16), w2t, preferred_element_type=jnp.float32) + b2 + x
    return jnp.maximum(y, 0.0)


if __name__ == "__main__":
    key = jax.random.PRNGKey(0)
    kx, kp = jax.random.split(key)

    # size multiple of 256 -> full MXU tile occupancy on v6e/v7x; still a small demo shape.
    batch, size = 512, 256
    x = jax.random.normal(kx, (batch, size), dtype=jnp.float32)
    w1t, b1, w2t, b2 = init_params(kp, size)

    # Reference computed (and materialized) first: x's buffer is donated to the kernel call.
    ref = jax.block_until_ready(reference_forward(x, w1t, b1, w2t, b2))

    fwd = jax.jit(res_layer_forward, donate_argnums=0)
    out = jax.block_until_ready(fwd(x, w1t, b1, w2t, b2))

    assert out.shape == (batch, size)
    assert bool(jnp.allclose(out, ref, atol=1e-2, rtol=1e-2)), "mismatch vs reference"

    print("KERNEL_OK")
</pallas_src>

<mosaic_0001>
module attributes {stable_mosaic.version = 11 : i64} {
  func.func @_res_layer_kernel(%arg0: i32, %arg1: memref<512x256xf32, #tpu.memory_space<vmem>>, %arg2: memref<256x256xbf16, #tpu.memory_space<vmem>>, %arg3: memref<1x256xf32, #tpu.memory_space<vmem>>, %arg4: memref<256x256xbf16, #tpu.memory_space<vmem>>, %arg5: memref<1x256xf32, #tpu.memory_space<vmem>>, %arg6: memref<512x256xf32, #tpu.memory_space<vmem>>) attributes {dimension_semantics = [#tpu.dimension_semantics<parallel>], iteration_bounds = array<i64: 1>, scalar_prefetch = 0 : i64, scratch_operands = 0 : i64, tpu.core_type = #tpu.core_type<tc>, window_params = [{transform_indices = @transform_0, window_bounds = array<i64: 512, 256>}, {pipeline_mode = #tpu.pipeline_mode<synchronous>, transform_indices = @transform_1, window_bounds = array<i64: 256, 256>}, {pipeline_mode = #tpu.pipeline_mode<synchronous>, transform_indices = @transform_2, window_bounds = array<i64: 1, 256>}, {pipeline_mode = #tpu.pipeline_mode<synchronous>, transform_indices = @transform_3, window_bounds = array<i64: 256, 256>}, {pipeline_mode = #tpu.pipeline_mode<synchronous>, transform_indices = @transform_4, window_bounds = array<i64: 1, 256>}, {transform_indices = @transform_5, window_bounds = array<i64: 512, 256>}]} {
    %c0 = arith.constant 0 : index
    %c0_0 = arith.constant 0 : index
    %0 = vector.load %arg1[%c0, %c0_0] : memref<512x256xf32, #tpu.memory_space<vmem>>, vector<512x256xf32>
    %1 = arith.truncf %0 : vector<512x256xf32> to vector<512x256xbf16>
    %c0_1 = arith.constant 0 : index
    %c0_2 = arith.constant 0 : index
    %2 = vector.load %arg2[%c0_1, %c0_2] : memref<256x256xbf16, #tpu.memory_space<vmem>>, vector<256x256xbf16>
    %cst = arith.constant dense<0.000000e+00> : vector<512x256xf32>
    %3 = tpu.matmul %1, %2, %cst {dimension_numbers = #tpu.dot_dimension_numbers<[1], [0], [0], [1], [0, 0, 1, 1], [], []>} : vector<512x256xbf16>, vector<256x256xbf16>, vector<512x256xf32> -> vector<512x256xf32>
    %c0_3 = arith.constant 0 : index
    %c0_4 = arith.constant 0 : index
    %4 = vector.load %arg3[%c0_3, %c0_4] : memref<1x256xf32, #tpu.memory_space<vmem>>, vector<1x256xf32>
    %5 = vector.broadcast %4 : vector<1x256xf32> to vector<512x256xf32>
    %6 = arith.addf %3, %5 : vector<512x256xf32>
    %cst_5 = arith.constant 0.000000e+00 : f32
    %7 = vector.broadcast %cst_5 : f32 to vector<512x256xf32>
    %8 = arith.maximumf %6, %7 : vector<512x256xf32>
    %9 = arith.truncf %8 : vector<512x256xf32> to vector<512x256xbf16>
    %c0_6 = arith.constant 0 : index
    %c0_7 = arith.constant 0 : index
    %10 = vector.load %arg4[%c0_6, %c0_7] : memref<256x256xbf16, #tpu.memory_space<vmem>>, vector<256x256xbf16>
    %cst_8 = arith.constant dense<0.000000e+00> : vector<512x256xf32>
    %11 = tpu.matmul %9, %10, %cst_8 {dimension_numbers = #tpu.dot_dimension_numbers<[1], [0], [0], [1], [0, 0, 1, 1], [], []>} : vector<512x256xbf16>, vector<256x256xbf16>, vector<512x256xf32> -> vector<512x256xf32>
    %c0_9 = arith.constant 0 : index
    %c0_10 = arith.constant 0 : index
    %12 = vector.load %arg5[%c0_9, %c0_10] : memref<1x256xf32, #tpu.memory_space<vmem>>, vector<1x256xf32>
    %13 = vector.broadcast %12 : vector<1x256xf32> to vector<512x256xf32>
    %14 = arith.addf %11, %13 : vector<512x256xf32>
    %15 = arith.addf %14, %0 : vector<512x256xf32>
    %cst_11 = arith.constant 0.000000e+00 : f32
    %16 = vector.broadcast %cst_11 : f32 to vector<512x256xf32>
    %17 = arith.maximumf %15, %16 : vector<512x256xf32>
    %c0_12 = arith.constant 0 : index
    %c0_13 = arith.constant 0 : index
    %18 = vector.load %arg6[%c0_12, %c0_13] : memref<512x256xf32, #tpu.memory_space<vmem>>, vector<512x256xf32>
    tpu.vector_store %arg6[%c0_12, %c0_13], %17 {strides = array<i32>} : memref<512x256xf32, #tpu.memory_space<vmem>>, vector<512x256xf32>,
    return
  }
  func.func @transform_0(%arg0: i32) -> (i32, i32) {
    %c0_i32 = arith.constant 0 : i32
    %c0_i32_0 = arith.constant 0 : i32
    return %arg0, %c0_i32 : i32, i32
  }
  func.func @transform_1(%arg0: i32) -> (i32, i32) {
    %c0_i32 = arith.constant 0 : i32
    %c0_i32_0 = arith.constant 0 : i32
    %c0_i32_1 = arith.constant 0 : i32
    return %c0_i32, %c0_i32_0 : i32, i32
  }
  func.func @transform_2(%arg0: i32) -> (i32, i32) {
    %c0_i32 = arith.constant 0 : i32
    %c0_i32_0 = arith.constant 0 : i32
    %c0_i32_1 = arith.constant 0 : i32
    return %c0_i32, %c0_i32_0 : i32, i32
  }
  func.func @transform_3(%arg0: i32) -> (i32, i32) {
    %c0_i32 = arith.constant 0 : i32
    %c0_i32_0 = arith.constant 0 : i32
    %c0_i32_1 = arith.constant 0 : i32
    return %c0_i32, %c0_i32_0 : i32, i32
  }
  func.func @transform_4(%arg0: i32) -> (i32, i32) {
    %c0_i32 = arith.constant 0 : i32
    %c0_i32_0 = arith.constant 0 : i32
    %c0_i32_1 = arith.constant 0 : i32
    return %c0_i32, %c0_i32_0 : i32, i32
  }
  func.func @transform_5(%arg0: i32) -> (i32, i32) {
    %c0_i32 = arith.constant 0 : i32
    %c0_i32_0 = arith.constant 0 : i32
    return %arg0, %c0_i32 : i32, i32
  }
}

</mosaic_0001>

<bundles_post_ra>
// kernel: res_layer_forward.1
= control target key start
LH: loop header
LB: loop body
LE: loop exit
PB: predicated region body
PF: predicated region fallthrough
CT: control target
= control target key end

     0   :  { %10 = vsyncpa [#allocation3], 0  ;;  %s2732_s0 = inlined_call_operand.hbm [shape: f32[512,256], index: 0, kind: input, shape index: {}, may-alias: {0,5}]   ;;  %s2733_s1 = inlined_call_operand.hbm [shape: bf16[256,256], index: 1, kind: input, shape index: {}]   ;;  %s2734_s2 = inlined_call_operand.vmem [shape: f32[1,256], index: 2, kind: input, shape index: {}]   ;;  %s2735_s3 = inlined_call_operand.hbm [shape: bf16[256,256], index: 3, kind: input, shape index: {}]   ;;  %s2736_s4 = inlined_call_operand.vmem [shape: f32[1,256], index: 4, kind: input, shape index: {}]   ;;  %s2737_s5 = inlined_call_operand.hbm [shape: f32[512,256], index: 5, kind: output, shape index: {}, may-alias: {0,5}]  }
   0x1   :  { %11 = vsyncpa [#allocation6], 0 }
   0x2   :  { %12 = vsyncpa [#allocation4], 0  ;;  %s2352_s18 = smov [#allocation5]   ;;  %s2258_s22 = scalar_lea.hbm %s2733_s1, 4096 }
   0x3   :  { %s30_s19 = sshll.u32 %s2352_s18, 4  ;;  %p2259_p0 = scmp.ne.s32.totalorder %s2733_s1, %s2258_s22  ;;  %s31_s19 = int_to_ptr.vmem [resolvable:$true] %s30_s19 }
   0x4   :  { %p2262_p1 = scmp.lt.u32.totalorder %s2258_s22, %s2733_s1 }
   0x6   :  { %p2264_p2 = pnand %p2262_p1, %p2259_p0 }
   0x8   :  { %2267 = shalt.err (!%p2264_p2)
}
   0x9   :  { %s2268_s27 = scalar_lea.vmem %s31_s19, 4096  ;;  %p2273_p4 = scmp.lt.s32.totalorder %s31_s19, %s31_s19 }
   0xa   :  { %p2269_p3 = scmp.ne.s32.totalorder %s31_s19, %s2268_s27  ;;  %p2274_p5 = scmp.lt.s32.totalorder %s2268_s27, %s2268_s27 }
   0xc   :  { %p2275_p6 = por %p2274_p5, %p2273_p4 }
   0xe   :  { %p2276_p7 = pnand %p2275_p6, %p2269_p3 }
  0x10   :  { %2279 = shalt.err (!%p2276_p7)
}
  0x11   :  { %s2353_s28 = smov 128   ;;  %s2354_s29 = smov 8  }
  0x12   :  { %36 = dma.hbm_to_vmem [thread:$0]  %s2733_s1, 4096, %s31_s19, [#allocation6], %s2353_s28, %s2353_s28, %s2354_s29  }
  0x13   :  { %s2355_s7 = smov [#allocation2]   ;;  %s2280_s11 = scalar_lea.hbm %s2732_s0, 16384 }
  0x14   :  { %s18_s8 = sshll.u32 %s2355_s7, 4  ;;  %p2281_p8 = scmp.ne.s32.totalorder %s2732_s0, %s2280_s11  ;;  %s19_s8 = int_to_ptr.vmem [resolvable:$true] %s18_s8 }
  0x15   :  { %p2284_p9 = scmp.lt.u32.totalorder %s2280_s11, %s2732_s0 }
  0x17   :  { %p2286_p10 = pnand %p2284_p9, %p2281_p8 }
  0x19   :  { %2289 = shalt.err (!%p2286_p10)
}
  0x1a   :  { %s2290_s16 = scalar_lea.vmem %s19_s8, 16384  ;;  %p2295_p12 = scmp.lt.s32.totalorder %s19_s8, %s19_s8 }
  0x1b   :  { %p2291_p11 = scmp.ne.s32.totalorder %s19_s8, %s2290_s16  ;;  %p2296_p13 = scmp.lt.s32.totalorder %s2290_s16, %s2290_s16 }
  0x1d   :  { %p2297_p0 = por %p2296_p13, %p2295_p12 }
  0x1f   :  { %p2298_p1 = pnand %p2297_p0, %p2291_p11 }
  0x21   :  { %2301 = shalt.err (!%p2298_p1)
}
  0x22   :  { %s2356_s1 = smov 256   ;;  %s2357_s17 = smov 16  }
  0x23   :  { %24 = dma.hbm_to_vmem [thread:$0]  %s2732_s0, 16384, %s19_s8, [#allocation3], %s2356_s1, %s2356_s1, %s2357_s17  }
  0x24   :  { %s2358_s20 = smov [#allocation7]   ;;  %s2302_s24 = scalar_lea.hbm %s2735_s3, 4096 }
  0x25   :  { %s44_s21 = sshll.u32 %s2358_s20, 4  ;;  %p2303_p2 = scmp.ne.s32.totalorder %s2735_s3, %s2302_s24  ;;  %s45_s21 = int_to_ptr.vmem [resolvable:$true] %s44_s21 }
  0x26   :  { %p2306_p3 = scmp.lt.u32.totalorder %s2302_s24, %s2735_s3 }
  0x28   :  { %p2308_p4 = pnand %p2306_p3, %p2303_p2 }
  0x2a   :  { %2311 = shalt.err (!%p2308_p4)
}
  0x2b   :  { %s2312_s6 = scalar_lea.vmem %s45_s21, 4096  ;;  %p2317_p6 = scmp.lt.s32.totalorder %s45_s21, %s45_s21 }
  0x2c   :  { %p2313_p5 = scmp.ne.s32.totalorder %s45_s21, %s2312_s6  ;;  %p2318_p7 = scmp.lt.s32.totalorder %s2312_s6, %s2312_s6 }
  0x2e   :  { %p2319_p8 = por %p2318_p7, %p2317_p6 }
  0x30   :  { %p2320_p9 = pnand %p2319_p8, %p2313_p5 }
  0x32   :  { %2323 = shalt.err (!%p2320_p9)
}
  0x33   :  { %50 = dma.hbm_to_vmem [thread:$0]  %s2735_s3, 4096, %s45_s21, [#allocation6], %s2353_s28, %s2353_s28, %s2354_s29  }
  0x34   :  { %2346 = dma.done.wait [#allocation3], 16384  }
  0x35   :  { %2347 = vsyncadd [#allocation3], 4294950912 }
  0x36   :  { %2348 = dma.done.wait [#allocation6], 8192  }
  0x37   :  { %2349 = vsyncadd [#allocation6], 4294959104  ;;  %v2034_v0 = vld [vmem:[#allocation5 + $0x4] ss:$8 sps:$4 sm:$0xff]   ;;  %v2036_v1 = vld [vmem:[#allocation5] ss:$8 sps:$4 sm:$0xff]  }
  0x38   :  { %458 = vmatprep.subr.bf16.mxu0 %v2034_v0  ;;  %v2037_v2 = vld [vmem:[#allocation5 + $0x14] ss:$8 sps:$4 sm:$0xff]   ;;  %v2039_v3 = vld [vmem:[#allocation5 + $0x10] ss:$8 sps:$4 sm:$0xff]   ;;  %v2040_v4 = vld [vmem:[#allocation5 + $0x24] ss:$8 sps:$4 sm:$0xff]  }
  0x39   :  { %459 = vmatpush1.bf16.msra.mxu0 %v2036_v1  ;;  %v2042_v5 = vld [vmem:[#allocation5 + $0x20] ss:$8 sps:$4 sm:$0xff]   ;;  %v2043_v6 = vld [vmem:[#allocation5 + $0x34] ss:$8 sps:$4 sm:$0xff]   ;;  %v2045_v7 = vld [vmem:[#allocation5 + $0x30] ss:$8 sps:$4 sm:$0xff]  }
  0x3a   :  { %460 = vmatprep.subr.bf16.mxu0 %v2037_v2  ;;  %v2046_v8 = vld [vmem:[#allocation5 + $0x44] ss:$8 sps:$4 sm:$0xff]   ;;  %v2048_v9 = vld [vmem:[#allocation5 + $0x40] ss:$8 sps:$4 sm:$0xff]   ;;  %v2049_v10 = vld [vmem:[#allocation5 + $0x54] ss:$8 sps:$4 sm:$0xff]  }
  0x3b   :  { %v2051_v11 = vld [vmem:[#allocation5 + $0x50] ss:$8 sps:$4 sm:$0xff]   ;;  %v2052_v12 = vld [vmem:[#allocation5 + $0x64] ss:$8 sps:$4 sm:$0xff]   ;;  %v2054_v16 = vld [vmem:[#allocation5 + $0x60] ss:$8 sps:$4 sm:$0xff]  }
  0x3c   :  { %v63_v13 = vld [vmem:[#allocation2 + $0x8] sm:$0xff]  ;;  %v65_v14 = vld [vmem:[#allocation2 + $0x18] sm:$0xff]  ;;  %v62_v35 = vld [vmem:[#allocation2] sm:$0xff] }
  0x3d   :  { %461 = vmatpush1.bf16.msra.mxu0 %v2039_v3  ;;  %v191_v15 = vpack.c.bf16 %v65_v14, %v63_v13  ;;  %v2055_v17 = vld [vmem:[#allocation5 + $0x74] ss:$8 sps:$4 sm:$0xff]   ;;  %v2057_v18 = vld [vmem:[#allocation5 + $0x70] ss:$8 sps:$4 sm:$0xff]   ;;  %v2058_v19 = vld [vmem:[#allocation5 + $0x84] ss:$8 sps:$4 sm:$0xff]  }
  0x3e   :  { %462 = vmatprep.subr.bf16.mxu0 %v2040_v4  ;;  %v2060_v20 = vld [vmem:[#allocation5 + $0x80] ss:$8 sps:$4 sm:$0xff]   ;;  %v2061_v21 = vld [vmem:[#allocation5 + $0x94] ss:$8 sps:$4 sm:$0xff]   ;;  %v2063_v22 = vld [vmem:[#allocation5 + $0x90] ss:$8 sps:$4 sm:$0xff]  }
  0x3f   :  { %490 = vmatprep.mubr.bf16.mxu0 %v191_v15  ;;  %v2064_v23 = vld [vmem:[#allocation5 + $0xa4] ss:$8 sps:$4 sm:$0xff]   ;;  %v2066_v24 = vld [vmem:[#allocation5 + $0xa0] ss:$8 sps:$4 sm:$0xff]   ;;  %v2067_v25 = vld [vmem:[#allocation5 + $0xb4] ss:$8 sps:$4 sm:$0xff]  }
  0x40   :  { %v2069_v26 = vld [vmem:[#allocation5 + $0xb0] ss:$8 sps:$4 sm:$0xff]   ;;  %v2070_v27 = vld [vmem:[#allocation5 + $0xc4] ss:$8 sps:$4 sm:$0xff]   ;;  %v2072_v28 = vld [vmem:[#allocation5 + $0xc0] ss:$8 sps:$4 sm:$0xff]  }
  0x41   :  { %463 = vmatpush1.bf16.msra.mxu0 %v2042_v5  ;;  %v2073_v29 = vld [vmem:[#allocation5 + $0xd4] ss:$8 sps:$4 sm:$0xff]   ;;  %v2075_v30 = vld [vmem:[#allocation5 + $0xd0] ss:$8 sps:$4 sm:$0xff]   ;;  %v2076_v31 = vld [vmem:[#allocation5 + $0xe4] ss:$8 sps:$4 sm:$0xff]  }
  0x42   :  { %464 = vmatprep.subr.bf16.mxu0 %v2043_v6  ;;  %v2078_v32 = vld [vmem:[#allocation5 + $0xe0] ss:$8 sps:$4 sm:$0xff]   ;;  %v2079_v33 = vld [vmem:[#allocation5 + $0xf4] ss:$8 sps:$4 sm:$0xff]   ;;  %v2081_v34 = vld [vmem:[#allocation5 + $0xf0] ss:$8 sps:$4 sm:$0xff]  }
  0x43   :  { %v64_v36 = vld [vmem:[#allocation2 + $0x10] sm:$0xff]  ;;  %v67_v37 = vld [vmem:[#allocation2 + $0x28] sm:$0xff]  ;;  %v69_v38 = vld [vmem:[#allocation2 + $0x38] sm:$0xff] }
  0x44   :  { %v190_v39 = vpack.c.bf16 %v64_v36, %v62_v35  ;;  %v193_v40 = vpack.c.bf16 %v69_v38, %v67_v37  ;;  %v66_v41 = vld [vmem:[#allocation2 + $0x20] sm:$0xff]  ;;  %v68_v42 = vld [vmem:[#allocation2 + $0x30] sm:$0xff]  ;;  %v71_v43 = vld [vmem:[#allocation2 + $0x48] sm:$0xff] }
  0x45   :  { %465 = vmatpush1.bf16.msra.mxu0 %v2045_v7  ;;  %v73_v44 = vld [vmem:[#allocation2 + $0x58] sm:$0xff]  ;;  %v192_v45 = vpack.c.bf16 %v68_v42, %v66_v41  ;;  %v70_v47 = vld [vmem:[#allocation2 + $0x40] sm:$0xff]  ;;  %v72_v48 = vld [vmem:[#allocation2 + $0x50] sm:$0xff] }
  0x46   :  { %466 = vmatprep.subr.bf16.mxu0 %v2046_v8  ;;  %v195_v46 = vpack.c.bf16 %v73_v44, %v71_v43  ;;  %v75_v49 = vld [vmem:[#allocation2 + $0x68] sm:$0xff]  ;;  %v77_v50 = vld [vmem:[#allocation2 + $0x78] sm:$0xff]  ;;  %v194_v51 = vpack.c.bf16 %v72_v48, %v70_v47  ;;  %v74_v53 = vld [vmem:[#allocation2 + $0x60] sm:$0xff] }
  0x47   :  { %v197_v52 = vpack.c.bf16 %v77_v50, %v75_v49  ;;  %v76_v54 = vld [vmem:[#allocation2 + $0x70] sm:$0xff]  ;;  %v79_v55 = vld [vmem:[#allocation2 + $0x88] sm:$0xff]  ;;  %v81_v56 = vld [vmem:[#allocation2 + $0x98] sm:$0xff] }
  0x48   :  { %v196_v57 = vpack.c.bf16 %v76_v54, %v74_v53  ;;  %v199_v58 = vpack.c.bf16 %v81_v56, %v79_v55  ;;  %v2082_v59 = vld [vmem:[#allocation7 + $0x4] ss:$8 sps:$4 sm:$0xff]   ;;  %v80_v61 = vld [vmem:[#allocation2 + $0x90] sm:$0xff]  ;;  %v2084_v62 = vld [vmem:[#allocation7] ss:$8 sps:$4 sm:$0xff]  }
  0x49   :  { %467 = vmatpush1.bf16.msra.mxu0 %v2048_v9  ;;  %v78_v60 = vld [vmem:[#allocation2 + $0x80] sm:$0xff]  ;;  %v83_v63 = vld [vmem:[#allocation2 + $0xa8] sm:$0xff]  ;;  %v85_v0 = vld [vmem:[#allocation2 + $0xb8] sm:$0xff]  ;;  %1207 = vmatprep.subr.bf16.mxu1 %v2082_v59 }
  0x4a   :  { %468 = vmatprep.subr.bf16.mxu0 %v2049_v10  ;;  %1208 = vmatpush1.bf16.msra.mxu1 %v2084_v62  ;;  %v198_v1 = vpack.c.bf16 %v80_v61, %v78_v60  ;;  %v201_v2 = vpack.c.bf16 %v85_v0, %v83_v63  ;;  %v2085_v3 = vld [vmem:[#allocation7 + $0x14] ss:$8 sps:$4 sm:$0xff]   ;;  %v2087_v4 = vld [vmem:[#allocation7 + $0x10] ss:$8 sps:$4 sm:$0xff]   ;;  %v2088_v5 = vld [vmem:[#allocation7 + $0x24] ss:$8 sps:$4 sm:$0xff]  }
  0x4b   :  { %v82_v6 = vld [vmem:[#allocation2 + $0xa0] sm:$0xff]  ;;  %v84_v7 = vld [vmem:[#allocation2 + $0xb0] sm:$0xff]  ;;  %v87_v8 = vld [vmem:[#allocation2 + $0xc8] sm:$0xff]  ;;  %1209 = vmatprep.subr.bf16.mxu1 %v2085_v3 }
  0x4c   :  { %v89_v9 = vld [vmem:[#allocation2 + $0xd8] sm:$0xff]  ;;  %v2090_v10 = vld [vmem:[#allocation7 + $0x20] ss:$8 sps:$4 sm:$0xff]   ;;  %v2094_v15 = vld [vmem:[#allocation7 + $0x44] ss:$8 sps:$4 sm:$0xff]  }
  0x4d   :  { %469 = vmatpush1.bf16.msra.mxu0 %v2051_v11  ;;  %v200_v11 = vpack.c.bf16 %v84_v7, %v82_v6  ;;  %v2091_v13 = vld [vmem:[#allocation7 + $0x34] ss:$8 sps:$4 sm:$0xff]   ;;  %v2093_v14 = vld [vmem:[#allocation7 + $0x30] ss:$8 sps:$4 sm:$0xff]   ;;  %v2106_v35 = vld [vmem:[#allocation7 + $0x84] ss:$8 sps:$4 sm:$0xff]  }
  0x4e   :  { %470 = vmatprep.subr.bf16.mxu0 %v2052_v12  ;;  %1210 = vmatpush1.bf16.msra.mxu1 %v2087_v4  ;;  %v203_v12 = vpack.c.bf16 %v89_v9, %v87_v8  ;;  %v94_v36 = vld [vmem:[#allocation2 + $0x100] sm:$0xff]  ;;  %v96_v37 = vld [vmem:[#allocation2 + $0x110] sm:$0xff]  ;;  %v99_v38 = vld [vmem:[#allocation2 + $0x128] sm:$0xff] }
  0x4f   :  { %1211 = vmatprep.subr.bf16.mxu1 %v2088_v5  ;;  %v206_v41 = vpack.c.bf16 %v96_v37, %v94_v36  ;;  %v2109_v43 = vld [vmem:[#allocation7 + $0x94] ss:$8 sps:$4 sm:$0xff]   ;;  %v2111_v44 = vld [vmem:[#allocation7 + $0x90] ss:$8 sps:$4 sm:$0xff]   ;;  %v103_v48 = vld [vmem:[#allocation2 + $0x148] sm:$0xff] }
  0x50   :  { %v100_v47 = vld [vmem:[#allocation2 + $0x130] sm:$0xff]  ;;  %v105_v49 = vld [vmem:[#allocation2 + $0x158] sm:$0xff]  ;;  %v2114_v50 = vld [vmem:[#allocation7 + $0xa0] ss:$8 sps:$4 sm:$0xff]  }
  0x51   :  { %471 = vmatpush1.bf16.msra.mxu0 %v2054_v16  ;;  %v86_v16 = vld [vmem:[#allocation2 + $0xc0] sm:$0xff]  ;;  %v2115_v53 = vld [vmem:[#allocation7 + $0xb4] ss:$8 sps:$4 sm:$0xff]   ;;  %v2117_v54 = vld [vmem:[#allocation7 + $0xb0] ss:$8 sps:$4 sm:$0xff]  }
  0x52   :  { %472 = vmatprep.subr.bf16.mxu0 %v2055_v17  ;;  %1212 = vmatpush1.bf16.msra.mxu1 %v2090_v10  ;;  %v88_v17 = vld [vmem:[#allocation2 + $0xd0] sm:$0xff]  ;;  %v2118_v55 = vld [vmem:[#allocation7 + $0xc4] ss:$8 sps:$4 sm:$0xff]   ;;  %v109_v59 = vld [vmem:[#allocation2 + $0x178] sm:$0xff] }
  0x53   :  { %1213 = vmatprep.subr.bf16.mxu1 %v2091_v13  ;;  %v102_v56 = vld [vmem:[#allocation2 + $0x140] sm:$0xff]  ;;  %v2121_v63 = vld [vmem:[#allocation7 + $0xd4] ss:$8 sps:$4 sm:$0xff]   ;;  %v111_v3 = vld [vmem:[#allocation2 + $0x188] sm:$0xff] }
  0x54   :  { %v2120_v60 = vld [vmem:[#allocation7 + $0xc0] ss:$8 sps:$4 sm:$0xff]   ;;  %v113_v4 = vld [vmem:[#allocation2 + $0x198] sm:$0xff]  ;;  %v2124_v6 = vld [vmem:[#allocation7 + $0xe4] ss:$8 sps:$4 sm:$0xff]  }
  0x55   :  { %473 = vmatpush1.bf16.msra.mxu0 %v2057_v18  ;;  %v91_v18 = vld [vmem:[#allocation2 + $0xe8] sm:$0xff]  ;;  %v106_v0 = vld [vmem:[#allocation2 + $0x160] sm:$0xff]  ;;  %v215_v7 = vpack.c.bf16 %v113_v4, %v111_v3  ;;  %v2127_v9 = vld [vmem:[#allocation7 + $0xf4] ss:$8 sps:$4 sm:$0xff]  }
  0x56   :  { %474 = vmatprep.subr.bf16.mxu0 %v2058_v19  ;;  %v93_v19 = vld [vmem:[#allocation2 + $0xf8] sm:$0xff]  ;;  %1214 = vmatpush1.bf16.msra.mxu1 %v2093_v14  ;;  %v2126_v8 = vld [vmem:[#allocation7 + $0xe0] ss:$8 sps:$4 sm:$0xff]   ;;  %v128_v36 = vld [vmem:[#allocation2 + $0x210] sm:$0xff] }
  0x57   :  { %1215 = vmatprep.subr.bf16.mxu1 %v2094_v15  ;;  %v110_v10 = vld [vmem:[#allocation2 + $0x180] sm:$0xff]  ;;  %v115_v13 = vld [vmem:[#allocation2 + $0x1a8] sm:$0xff]  ;;  %v117_v14 = vld [vmem:[#allocation2 + $0x1b8] sm:$0xff] }
  0x58   :  { %v131_v37 = vld [vmem:[#allocation2 + $0x228] sm:$0xff]  ;;  %v153_v4 = vld [vmem:[#allocation2 + $0x2d8] sm:$0xff] }
  0x59   :  { %475 = vmatpush1.bf16.msra.mxu0 %v2060_v20  ;;  %v2096_v20 = vld [vmem:[#allocation7 + $0x40] ss:$8 sps:$4 sm:$0xff]  }
  0x5a   :  { %476 = vmatprep.subr.bf16.mxu0 %v2061_v21  ;;  %v202_v21 = vpack.c.bf16 %v88_v17, %v86_v16  ;;  %1216 = vmatpush1.bf16.msra.mxu1 %v2096_v20  ;;  %v217_v16 = vpack.c.bf16 %v117_v14, %v115_v13  ;;  %v114_v17 = vld [vmem:[#allocation2 + $0x1a0] sm:$0xff]  ;;  %v121_v20 = vld [vmem:[#allocation2 + $0x1d8] sm:$0xff]  ;;  %v151_v3 = vld [vmem:[#allocation2 + $0x2c8] sm:$0xff] }
  0x5b   :  { %v154_v13 = vld [vmem:[#allocation2 + $0x2e0] sm:$0xff]  ;;  %v156_v14 = vld [vmem:[#allocation2 + $0x2f0] sm:$0xff] }
  0x5d   :  { %477 = vmatpush1.bf16.msra.mxu0 %v2063_v22  ;;  %v205_v22 = vpack.c.bf16 %v93_v19, %v91_v18  ;;  %v116_v18 = vld [vmem:[#allocation2 + $0x1b0] sm:$0xff]  ;;  %v119_v19 = vld [vmem:[#allocation2 + $0x1c8] sm:$0xff] }
  0x5e   :  { %478 = vmatprep.subr.bf16.mxu0 %v2064_v23  ;;  %v2097_v23 = vld [vmem:[#allocation7 + $0x54] ss:$8 sps:$4 sm:$0xff]  }
  0x5f   :  { %1217 = vmatprep.subr.bf16.mxu1 %v2097_v23  ;;  %v118_v23 = vld [vmem:[#allocation2 + $0x1c0] sm:$0xff] }
  0x61   :  { %479 = vmatpush1.bf16.msra.mxu0 %v2066_v24  ;;  %v2099_v24 = vld [vmem:[#allocation7 + $0x50] ss:$8 sps:$4 sm:$0xff]  }
  0x62   :  { %480 = vmatprep.subr.bf16.mxu0 %v2067_v25  ;;  %v2100_v25 = vld [vmem:[#allocation7 + $0x64] ss:$8 sps:$4 sm:$0xff]   ;;  %1218 = vmatpush1.bf16.msra.mxu1 %v2099_v24  ;;  %v120_v24 = vld [vmem:[#allocation2 + $0x1d0] sm:$0xff] }
  0x63   :  { %1219 = vmatprep.subr.bf16.mxu1 %v2100_v25  ;;  %v123_v25 = vld [vmem:[#allocation2 + $0x1e8] sm:$0xff] }
  0x65   :  { %481 = vmatpush1.bf16.msra.mxu0 %v2069_v26  ;;  %v90_v26 = vld [vmem:[#allocation2 + $0xe0] sm:$0xff] }
  0x66   :  { %482 = vmatprep.subr.bf16.mxu0 %v2070_v27  ;;  %v92_v27 = vld [vmem:[#allocation2 + $0xf0] sm:$0xff] }
  0x69   :  { %483 = vmatpush1.bf16.msra.mxu0 %v2072_v28  ;;  %v95_v28 = vld [vmem:[#allocation2 + $0x108] sm:$0xff] }
  0x6a   :  { %484 = vmatprep.subr.bf16.mxu0 %v2073_v29  ;;  %v97_v29 = vld [vmem:[#allocation2 + $0x118] sm:$0xff] }
  0x6d   :  { %485 = vmatpush1.bf16.msra.mxu0 %v2075_v30  ;;  %v2102_v30 = vld [vmem:[#allocation7 + $0x60] ss:$8 sps:$4 sm:$0xff]  }
  0x6e   :  { %486 = vmatprep.subr.bf16.mxu0 %v2076_v31  ;;  %v204_v31 = vpack.c.bf16 %v92_v27, %v90_v26  ;;  %1220 = vmatpush1.bf16.msra.mxu1 %v2102_v30  ;;  %v125_v26 = vld [vmem:[#allocation2 + $0x1f8] sm:$0xff]  ;;  %v218_v27 = vpack.c.bf16 %v120_v24, %v118_v23  ;;  %v124_v30 = vld [vmem:[#allocation2 + $0x1f0] sm:$0xff] }
  0x71   :  { %487 = vmatpush1.bf16.msra.mxu0 %v2078_v32  ;;  %v207_v32 = vpack.c.bf16 %v97_v29, %v95_v28  ;;  %v221_v28 = vpack.c.bf16 %v125_v26, %v123_v25  ;;  %v122_v29 = vld [vmem:[#allocation2 + $0x1e0] sm:$0xff]  ;;  %v164_v26 = vld [vmem:[#allocation2 + $0x330] sm:$0xff] }
  0x72   :  { %488 = vmatprep.subr.bf16.mxu0 %v2079_v33  ;;  %v2103_v33 = vld [vmem:[#allocation7 + $0x74] ss:$8 sps:$4 sm:$0xff]   ;;  %v162_v25 = vld [vmem:[#allocation2 + $0x320] sm:$0xff] }
  0x73   :  { %1221 = vmatprep.subr.bf16.mxu1 %v2103_v33  ;;  %v220_v33 = vpack.c.bf16 %v124_v30, %v122_v29  ;;  %v240_v29 = vpack.c.bf16 %v164_v26, %v162_v25  ;;  %v288_v30 = vlaneseq }
  0x75   :  { %489 = vmatpush1.bf16.msra.mxu0 %v2081_v34  ;;  %v2105_v34 = vld [vmem:[#allocation7 + $0x70] ss:$8 sps:$4 sm:$0xff]  }
  0x76   :  { %1222 = vmatpush1.bf16.msra.mxu1 %v2105_v34 }
  0x77   :  { %1223 = vmatprep.subr.bf16.mxu1 %v2106_v35  ;;  %v126_v35 = vld [vmem:[#allocation2 + $0x200] sm:$0xff] }
  0x78   :  { %491 = vmatmul.mubr.bf16.vlgmr.msra.gmra.mrb[0].mxu0 %v190_v39  ;;  %v101_v39 = vld [vmem:[#allocation2 + $0x138] sm:$0xff] }
  0x79   :  { %500 = vmatprep.mubr.bf16.mxu0 %v193_v40  ;;  %v2108_v40 = vld [vmem:[#allocation7 + $0x80] ss:$8 sps:$4 sm:$0xff]   ;;  %v209_v42 = vpack.c.bf16 %v101_v39, %v99_v38  ;;  %v133_v38 = vld [vmem:[#allocation2 + $0x238] sm:$0xff]  ;;  %v222_v39 = vpack.c.bf16 %v128_v36, %v126_v35 }
  0x7a   :  { %1224 = vmatpush1.bf16.msra.mxu1 %v2108_v40  ;;  %v225_v40 = vpack.c.bf16 %v133_v38, %v131_v37  ;;  %v171_v35 = vld [vmem:[#allocation2 + $0x368] sm:$0xff]  ;;  %v173_v36 = vld [vmem:[#allocation2 + $0x378] sm:$0xff] }
  0x7b   :  { %1225 = vmatprep.subr.bf16.mxu1 %v2109_v43  ;;  %v135_v43 = vld [vmem:[#allocation2 + $0x248] sm:$0xff] }
  0x7e   :  { %1226 = vmatpush1.bf16.msra.mxu1 %v2111_v44  ;;  %v137_v44 = vld [vmem:[#allocation2 + $0x258] sm:$0xff] }
  0x80   :  { %501 = vmatmul.mubr.bf16.gmra.mrb[4].mxu0 %v192_v45  ;;  %v2112_v45 = vld [vmem:[#allocation7 + $0xa4] ss:$8 sps:$4 sm:$0xff]  }
  0x81   :  { %510 = vmatprep.mubr.bf16.mxu0 %v195_v46  ;;  %v98_v46 = vld [vmem:[#allocation2 + $0x120] sm:$0xff]  ;;  %1227 = vmatprep.subr.bf16.mxu1 %v2112_v45 }
  0x82   :  { %1228 = vmatpush1.bf16.msra.mxu1 %v2114_v50  ;;  %v141_v50 = vld [vmem:[#allocation2 + $0x278] sm:$0xff] }
  0x83   :  { %1229 = vmatprep.subr.bf16.mxu1 %v2115_v53  ;;  %v138_v53 = vld [vmem:[#allocation2 + $0x260] sm:$0xff] }
  0x86   :  { %1230 = vmatpush1.bf16.msra.mxu1 %v2117_v54  ;;  %v140_v54 = vld [vmem:[#allocation2 + $0x270] sm:$0xff] }
  0x87   :  { %1231 = vmatprep.subr.bf16.mxu1 %v2118_v55  ;;  %v143_v55 = vld [vmem:[#allocation2 + $0x288] sm:$0xff] }
  0x88   :  { %511 = vmatmul.mubr.bf16.gmra.mrb[8].mxu0 %v194_v51  ;;  %v208_v51 = vpack.c.bf16 %v100_v47, %v98_v46  ;;  %v227_v46 = vpack.c.bf16 %v137_v44, %v135_v43  ;;  %v134_v47 = vld [vmem:[#allocation2 + $0x240] sm:$0xff] }
  0x89   :  { %520 = vmatprep.mubr.bf16.mxu0 %v197_v52  ;;  %v211_v52 = vpack.c.bf16 %v105_v49, %v103_v48  ;;  %v136_v48 = vld [vmem:[#allocation2 + $0x250] sm:$0xff]  ;;  %v139_v49 = vld [vmem:[#allocation2 + $0x268] sm:$0xff]  ;;  %v170_v44 = vld [vmem:[#allocation2 + $0x360] sm:$0xff] }
  0x8a   :  { %1232 = vmatpush1.bf16.msra.mxu1 %v2120_v60  ;;  %v144_v60 = vld [vmem:[#allocation2 + $0x290] sm:$0xff] }
  0x8b   :  { %1233 = vmatprep.subr.bf16.mxu1 %v2121_v63 }
  0x90   :  { %521 = vmatmul.mubr.bf16.gmra.mrb[12].mxu0 %v196_v57  ;;  %v104_v57 = vld [vmem:[#allocation2 + $0x150] sm:$0xff] }
  0x91   :  { %530 = vmatprep.mubr.bf16.mxu0 %v199_v58  ;;  %v107_v58 = vld [vmem:[#allocation2 + $0x168] sm:$0xff]  ;;  %v210_v61 = vpack.c.bf16 %v104_v57, %v102_v56  ;;  %v145_v56 = vld [vmem:[#allocation2 + $0x298] sm:$0xff]  ;;  %v228_v57 = vpack.c.bf16 %v140_v54, %v138_v53 }
  0x92   :  { %v213_v62 = vpack.c.bf16 %v109_v59, %v107_v58  ;;  %v231_v58 = vpack.c.bf16 %v145_v56, %v143_v55  ;;  %v142_v59 = vld [vmem:[#allocation2 + $0x280] sm:$0xff] }
  0x93   :  { %v230_v63 = vpack.c.bf16 %v144_v60, %v142_v59 }
  0x98   :  { %531 = vmatmul.mubr.bf16.gmra.mrb[16].mxu0 %v198_v1  ;;  %v108_v1 = vld [vmem:[#allocation2 + $0x170] sm:$0xff] }
  0x99   :  { %540 = vmatprep.mubr.bf16.mxu0 %v201_v2  ;;  %v2123_v2 = vld [vmem:[#allocation7 + $0xd0] ss:$8 sps:$4 sm:$0xff]   ;;  %v212_v5 = vpack.c.bf16 %v108_v1, %v106_v0  ;;  %v146_v1 = vld [vmem:[#allocation2 + $0x2a0] sm:$0xff] }
  0x9a   :  { %1234 = vmatpush1.bf16.msra.mxu1 %v2123_v2  ;;  %v148_v2 = vld [vmem:[#allocation2 + $0x2b0] sm:$0xff] }
  0x9b   :  { %1235 = vmatprep.subr.bf16.mxu1 %v2124_v6  ;;  %v235_v6 = vpack.c.bf16 %v153_v4, %v151_v3 }
  0x9e   :  { %1236 = vmatpush1.bf16.msra.mxu1 %v2126_v8  ;;  %v152_v8 = vld [vmem:[#allocation2 + $0x2d0] sm:$0xff] }
  0x9f   :  { %1237 = vmatprep.subr.bf16.mxu1 %v2127_v9  ;;  %v155_v9 = vld [vmem:[#allocation2 + $0x2e8] sm:$0xff] }
  0xa0   :  { %541 = vmatmul.mubr.bf16.gmra.mrb[20].mxu0 %v200_v11  ;;  %v112_v11 = vld [vmem:[#allocation2 + $0x190] sm:$0xff] }
  0xa1   :  { %550 = vmatprep.mubr.bf16.mxu0 %v203_v12  ;;  %v2129_v12 = vld [vmem:[#allocation7 + $0xf0] ss:$8 sps:$4 sm:$0xff]   ;;  %v214_v15 = vpack.c.bf16 %v112_v11, %v110_v10 }
  0xa2   :  { %1238 = vmatpush1.bf16.msra.mxu1 %v2129_v12  ;;  %v157_v10 = vld [vmem:[#allocation2 + $0x2f8] sm:$0xff] }
  0xa3   :  { %v237_v12 = vpack.c.bf16 %v157_v10, %v155_v9 }
  0xa8   :  { %551 = vmatmul.mubr.bf16.gmra.mrb[24].mxu0 %v202_v21  ;;  %v216_v21 = vpack.c.bf16 %v116_v18, %v114_v17  ;;  %v236_v17 = vpack.c.bf16 %v156_v14, %v154_v13 }
  0xa9   :  { %560 = vmatprep.mubr.bf16.mxu0 %v205_v22  ;;  %v219_v22 = vpack.c.bf16 %v121_v20, %v119_v19  ;;  %v158_v19 = vld [vmem:[#allocation2 + $0x300] sm:$0xff]  ;;  %v160_v20 = vld [vmem:[#allocation2 + $0x310] sm:$0xff] }
  0xaa   :  { %v238_v23 = vpack.c.bf16 %v160_v20, %v158_v19  ;;  %v180_v19 = vld [vmem:[#allocation2 + $0x3b0] sm:$0xff] }
  0xb0   :  { %561 = vmatmul.mubr.bf16.gmra.mrb[28].mxu0 %v204_v31  ;;  %v127_v31 = vld [vmem:[#allocation2 + $0x208] sm:$0xff] }
  0xb1   :  { %570 = vmatprep.mubr.bf16.mxu0 %v207_v32  ;;  %v129_v32 = vld [vmem:[#allocation2 + $0x218] sm:$0xff] }
  0xb2   :  { %v223_v34 = vpack.c.bf16 %v129_v32, %v127_v31  ;;  %v2435_v32 = vshrl.u32 %v288_v30, 7 }
  0xb4   :  { %v290_v38 = vsub.s32 0, %v2435_v32 }
  0xb8   :  { %571 = vmatmul.mubr.bf16.gmra.mrb[32].mxu0 %v206_v41  ;;  %v130_v41 = vld [vmem:[#allocation2 + $0x220] sm:$0xff] }
  0xb9   :  { %580 = vmatprep.mubr.bf16.mxu0 %v209_v42  ;;  %v132_v42 = vld [vmem:[#allocation2 + $0x230] sm:$0xff] }
  0xba   :  { %v224_v45 = vpack.c.bf16 %v132_v42, %v130_v41  ;;  %v245_v41 = vpack.c.bf16 %v173_v36, %v171_v35 }
  0xc0   :  { %581 = vmatmul.mubr.bf16.gmra.mrb[36].mxu0 %v208_v51  ;;  %v226_v51 = vpack.c.bf16 %v136_v48, %v134_v47  ;;  %v177_v47 = vld [vmem:[#allocation2 + $0x398] sm:$0xff] }
  0xc1   :  { %590 = vmatprep.mubr.bf16.mxu0 %v211_v52  ;;  %v229_v52 = vpack.c.bf16 %v141_v50, %v139_v49 }
  0xc8   :  { %591 = vmatmul.mubr.bf16.gmra.mrb[40].mxu0 %v210_v61  ;;  %v147_v61 = vld [vmem:[#allocation2 + $0x2a8] sm:$0xff] }
  0xc9   :  { %600 = vmatprep.mubr.bf16.mxu0 %v213_v62  ;;  %v149_v62 = vld [vmem:[#allocation2 + $0x2b8] sm:$0xff] }
  0xca   :  { %v233_v0 = vpack.c.bf16 %v149_v62, %v147_v61  ;;  %v174_v62 = vld [vmem:[#allocation2 + $0x380] sm:$0xff] }
  0xd0   :  { %601 = vmatmul.mubr.bf16.gmra.mrb[44].mxu0 %v212_v5  ;;  %v232_v5 = vpack.c.bf16 %v148_v2, %v146_v1  ;;  %v179_v1 = vld [vmem:[#allocation2 + $0x3a8] sm:$0xff]  ;;  %v181_v2 = vld [vmem:[#allocation2 + $0x3b8] sm:$0xff] }
  0xd1   :  { %610 = vmatprep.mubr.bf16.mxu0 %v215_v7  ;;  %v150_v7 = vld [vmem:[#allocation2 + $0x2c0] sm:$0xff]  ;;  %v249_v10 = vpack.c.bf16 %v181_v2, %v179_v1 }
  0xd2   :  { %v234_v11 = vpack.c.bf16 %v152_v8, %v150_v7 }
  0xd8   :  { %611 = vmatmul.mubr.bf16.gmra.mrb[48].mxu0 %v214_v15  ;;  %v159_v15 = vld [vmem:[#allocation2 + $0x308] sm:$0xff] }
  0xd9   :  { %620 = vmatprep.mubr.bf16.mxu0 %v217_v16  ;;  %v161_v16 = vld [vmem:[#allocation2 + $0x318] sm:$0xff] }
  0xda   :  { %v239_v18 = vpack.c.bf16 %v161_v16, %v159_v15 }
  0xe0   :  { %621 = vmatmul.mubr.bf16.gmra.mrb[52].mxu0 %v216_v21  ;;  %v163_v21 = vld [vmem:[#allocation2 + $0x328] sm:$0xff] }
  0xe1   :  { %630 = vmatprep.mubr.bf16.mxu0 %v219_v22  ;;  %v165_v22 = vld [vmem:[#allocation2 + $0x338] sm:$0xff] }
  0xe2   :  { %v241_v24 = vpack.c.bf16 %v165_v22, %v163_v21  ;;  %v183_v21 = vld [vmem:[#allocation2 + $0x3c8] sm:$0xff]  ;;  %v185_v22 = vld [vmem:[#allocation2 + $0x3d8] sm:$0xff] }
  0xe3   :  { %v251_v30 = vpack.c.bf16 %v185_v22, %v183_v21 }
  0xe8   :  { %631 = vmatmul.mubr.bf16.gmra.mrb[56].mxu0 %v218_v27  ;;  %v167_v27 = vld [vmem:[#allocation2 + $0x348] sm:$0xff] }
  0xe9   :  { %640 = vmatprep.mubr.bf16.mxu0 %v221_v28  ;;  %v169_v28 = vld [vmem:[#allocation2 + $0x358] sm:$0xff] }
  0xea   :  { %v243_v31 = vpack.c.bf16 %v169_v28, %v167_v27 }
  0xf0   :  { %641 = vmatmul.mubr.bf16.gmra.mrb[60].mxu0 %v220_v33  ;;  %v166_v33 = vld [vmem:[#allocation2 + $0x340] sm:$0xff] }
  0xf1   :  { %650 = vmatprep.mubr.bf16.mxu0 %v223_v34  ;;  %v168_v34 = vld [vmem:[#allocation2 + $0x350] sm:$0xff] }
  0xf2   :  { %v242_v37 = vpack.c.bf16 %v168_v34, %v166_v33 }
  0xf8   :  { %651 = vmatmul.mubr.bf16.gmra.mrb[64].mxu0 %v222_v39  ;;  %v286_v39 = vld [vmem:[%s2734_s2] sm:$0x3] }
  0xf9   :  { %660 = vmatprep.mubr.bf16.mxu0 %v225_v40  ;;  %v294_v40 = vsub.s32 1, %v2435_v32  ;;  %v2444_v42 = vrot.slane %v286_v39, %v290_v38 }
  0xfb   :  { %v2448_v43 = vrot.slane %v286_v39, %v294_v40 }
 0x100   :  { %661 = vmatmul.mubr.bf16.gmra.mrb[68].mxu0 %v224_v45  ;;  %v172_v45 = vld [vmem:[#allocation2 + $0x370] sm:$0xff] }
 0x101   :  { %670 = vmatprep.mubr.bf16.mxu0 %v227_v46  ;;  %v175_v46 = vld [vmem:[#allocation2 + $0x388] sm:$0xff] }
 0x102   :  { %v247_v54 = vpack.c.bf16 %v177_v47, %v175_v46  ;;  %v187_v46 = vld [vmem:[#allocation2 + $0x3e8] sm:$0xff]  ;;  %v189_v47 = vld [vmem:[#allocation2 + $0x3f8] sm:$0xff] }
 0x108   :  { %671 = vmatmul.mubr.bf16.gmra.mrb[72].mxu0 %v226_v51  ;;  %v244_v51 = vpack.c.bf16 %v172_v45, %v170_v44  ;;  %v184_v44 = vld [vmem:[#allocation2 + $0x3d0] sm:$0xff] }
 0x109   :  { %680 = vmatprep.mubr.bf16.mxu0 %v229_v52 }
 0x110   :  { %681 = vmatmul.mubr.bf16.gmra.mrb[76].mxu0 %v228_v57 }
 0x111   :  { %690 = vmatprep.mubr.bf16.mxu0 %v231_v58 }
 0x118   :  { %691 = vmatmul.mubr.bf16.gmra.mrb[80].mxu0 %v230_v63  ;;  %v176_v63 = vld [vmem:[#allocation2 + $0x390] sm:$0xff] }
 0x119   :  { %700 = vmatprep.mubr.bf16.mxu0 %v233_v0  ;;  %v246_v7 = vpack.c.bf16 %v176_v63, %v174_v62  ;;  %v186_v63 = vld [vmem:[#allocation2 + $0x3e0] sm:$0xff] }
 0x120   :  { %701 = vmatmul.mubr.bf16.gmra.mrb[84].mxu0 %v232_v5 }
 0x121   :  { %710 = vmatprep.mubr.bf16.mxu0 %v235_v6 }
 0x128   :  { %711 = vmatmul.mubr.bf16.gmra.mrb[88].mxu0 %v234_v11 }
 0x129   :  { %720 = vmatprep.mubr.bf16.mxu0 %v237_v12 }
 0x130   :  { %721 = vmatmul.mubr.bf16.gmra.mrb[92].mxu0 %v236_v17 }
 0x131   :  { %730 = vmatprep.mubr.bf16.mxu0 %v239_v18  ;;  %v178_v18 = vld [vmem:[#allocation2 + $0x3a0] sm:$0xff] }
 0x132   :  { %v248_v27 = vpack.c.bf16 %v180_v19, %v178_v18 }
 0x138   :  { %731 = vmatmul.mubr.bf16.gmra.mrb[96].mxu0 %v238_v23 }
 0x139   :  { %740 = vmatprep.mubr.bf16.mxu0 %v241_v24 }
 0x140   :  { %741 = vmatmul.mubr.bf16.gmra.mrb[100].mxu0 %v240_v29 }
 0x141   :  { %750 = vmatprep.mubr.bf16.mxu0 %v243_v31 }
 0x148   :  { %751 = vmatmul.mubr.bf16.gmra.mrb[104].mxu0 %v242_v37 }
 0x149   :  { %760 = vmatprep.mubr.bf16.mxu0 %v245_v41  ;;  %v182_v41 = vld [vmem:[#allocation2 + $0x3c0] sm:$0xff] }
 0x14b   :  { %v492_v48 = vpop.f32.mrb[0].mxu0 }
 0x14c   :  { %v493_v49 = vadd.f32 %v492_v48, %v2444_v42  ;;  %v494_v50 = vpop.f32.mrb[1].mxu0 }
 0x14d   :  { %v495_v52 = vadd.f32 %v494_v50, %v2448_v43  ;;  %v496_v53 = vpop.f32.mrb[2].mxu0 }
 0x14e   :  { %v497_v55 = vadd.f32 %v496_v53, %v2444_v42  ;;  %v498_v56 = vpop.f32.mrb[3].mxu0  ;;  %v811_v58 = vmax.f32 %v493_v49, 0.0 }
 0x14f   :  { %v499_v57 = vadd.f32 %v498_v56, %v2448_v43  ;;  %v812_v60 = vmax.f32 %v495_v52, 0.0  ;;  %v250_v52 = vpack.c.bf16 %v184_v44, %v182_v41 }
 0x150   :  { %v813_v59 = vmax.f32 %v497_v55, 0.0  ;;  %761 = vmatmul.mubr.bf16.gmra.mrb[108].mxu0 %v244_v51  ;;  %v253_v55 = vpack.c.bf16 %v189_v47, %v187_v46 }
 0x151   :  { %v814_v61 = vmax.f32 %v499_v57, 0.0  ;;  %770 = vmatprep.mubr.bf16.mxu0 %v247_v54 }
 0x152   :  { %v939_v0 = vpack.c.bf16 %v813_v59, %v811_v58 }
 0x153   :  { %v502_v3 = vpop.f32.mrb[4].mxu0  ;;  %v940_v4 = vpack.c.bf16 %v814_v61, %v812_v60 }
 0x154   :  { %v503_v5 = vadd.f32 %v502_v3, %v2444_v42  ;;  %v504_v6 = vpop.f32.mrb[5].mxu0 }
 0x155   :  { %v505_v8 = vadd.f32 %v504_v6, %v2448_v43  ;;  %v506_v9 = vpop.f32.mrb[6].mxu0  ;;  %1239 = vmatprep.mubr.bf16.mxu1 %v940_v4 }
 0x156   :  { %v507_v11 = vadd.f32 %v506_v9, %v2444_v42  ;;  %v508_v12 = vpop.f32.mrb[7].mxu0  ;;  %1240 = vmatmul.mubr.bf16.vlgmr.msra.gmra.mrb[0].mxu1 %v939_v0  ;;  %v815_v14 = vmax.f32 %v503_v5, 0.0  ;;  %v188_v0 = vld [vmem:[#allocation2 + $0x3f0] sm:$0xff] }
 0x157   :  { %v509_v13 = vadd.f32 %v508_v12, %v2448_v43  ;;  %v816_v16 = vmax.f32 %v505_v8, 0.0  ;;  %v252_v6 = vpack.c.bf16 %v188_v0, %v186_v63 }
 0x158   :  { %v817_v15 = vmax.f32 %v507_v11, 0.0  ;;  %771 = vmatmul.mubr.bf16.gmra.mrb[112].mxu0 %v246_v7 }
 0x159   :  { %v818_v17 = vmax.f32 %v509_v13, 0.0  ;;  %780 = vmatprep.mubr.bf16.mxu0 %v249_v10 }
 0x15a   :  { %v941_v20 = vpack.c.bf16 %v817_v15, %v815_v14 }
 0x15b   :  { %v942_v23 = vpack.c.bf16 %v818_v17, %v816_v16  ;;  %v512_v24 = vpop.f32.mrb[8].mxu0 }
 0x15c   :  { %v513_v25 = vadd.f32 %v512_v24, %v2444_v42  ;;  %v514_v26 = vpop.f32.mrb[9].mxu0 }
 0x15d   :  { %v515_v28 = vadd.f32 %v514_v26, %v2448_v43  ;;  %v516_v29 = vpop.f32.mrb[10].mxu0  ;;  %1249 = vmatprep.mubr.bf16.mxu1 %v942_v23 }
 0x15e   :  { %v517_v31 = vadd.f32 %v516_v29, %v2444_v42  ;;  %v518_v33 = vpop.f32.mrb[11].mxu0  ;;  %1250 = vmatmul.mubr.bf16.gmra.mrb[4].mxu1 %v941_v20  ;;  %v819_v35 = vmax.f32 %v513_v25, 0.0 }
 0x15f   :  { %v519_v34 = vadd.f32 %v518_v33, %v2448_v43  ;;  %v820_v37 = vmax.f32 %v515_v28, 0.0 }
 0x160   :  { %v821_v36 = vmax.f32 %v517_v31, 0.0  ;;  %781 = vmatmul.mubr.bf16.gmra.mrb[116].mxu0 %v248_v27 }
 0x161   :  { %v822_v39 = vmax.f32 %v519_v34, 0.0  ;;  %790 = vmatprep.mubr.bf16.mxu0 %v251_v30 }
 0x162   :  { %v943_v45 = vpack.c.bf16 %v821_v36, %v819_v35 }
 0x163   :  { %v944_v48 = vpack.c.bf16 %v822_v39, %v820_v37  ;;  %v522_v49 = vpop.f32.mrb[12].mxu0 }
 0x164   :  { %v523_v50 = vadd.f32 %v522_v49, %v2444_v42  ;;  %v524_v51 = vpop.f32.mrb[13].mxu0 }
 0x165   :  { %v525_v53 = vadd.f32 %v524_v51, %v2448_v43  ;;  %v526_v54 = vpop.f32.mrb[14].mxu0  ;;  %1259 = vmatprep.mubr.bf16.mxu1 %v944_v48 }
 0x166   :  { %v527_v56 = vadd.f32 %v526_v54, %v2444_v42  ;;  %v528_v57 = vpop.f32.mrb[15].mxu0  ;;  %1260 = vmatmul.mubr.bf16.gmra.mrb[8].mxu1 %v943_v45  ;;  %v823_v59 = vmax.f32 %v523_v50, 0.0 }
 0x167   :  { %v529_v58 = vadd.f32 %v528_v57, %v2448_v43  ;;  %v824_v61 = vmax.f32 %v525_v53, 0.0 }
 0x168   :  { %v825_v60 = vmax.f32 %v527_v56, 0.0  ;;  %791 = vmatmul.mubr.bf16.gmra.mrb[120].mxu0 %v250_v52 }
 0x169   :  { %v826_v62 = vmax.f32 %v529_v58, 0.0  ;;  %800 = vmatprep.mubr.bf16.mxu0 %v253_v55 }
 0x16a   :  { %v945_v1 = vpack.c.bf16 %v825_v60, %v823_v59 }
 0x16b   :  { %v946_v2 = vpack.c.bf16 %v826_v62, %v824_v61  ;;  %v532_v3 = vpop.f32.mrb[16].mxu0 }
 0x16c   :  { %v533_v4 = vadd.f32 %v532_v3, %v2444_v42  ;;  %v534_v5 = vpop.f32.mrb[17].mxu0 }
 0x16d   :  { %v535_v7 = vadd.f32 %v534_v5, %v2448_v43  ;;  %v536_v8 = vpop.f32.mrb[18].mxu0  ;;  %1269 = vmatprep.mubr.bf16.mxu1 %v946_v2 }
 0x16e   :  { %v537_v9 = vadd.f32 %v536_v8, %v2444_v42  ;;  %v538_v10 = vpop.f32.mrb[19].mxu0  ;;  %1270 = vmatmul.mubr.bf16.gmra.mrb[12].mxu1 %v945_v1  ;;  %v827_v12 = vmax.f32 %v533_v4, 0.0 }
 0x16f   :  { %v539_v11 = vadd.f32 %v538_v10, %v2448_v43  ;;  %v828_v14 = vmax.f32 %v535_v7, 0.0 }
 0x170   :  { %v829_v13 = vmax.f32 %v537_v9, 0.0  ;;  %801 = vmatmul.mubr.bf16.gmra.mrb[124].mxu0 %v252_v6 }
 0x171   :  { %v830_v15 = vmax.f32 %v539_v11, 0.0 }
 0x172   :  { %v947_v16 = vpack.c.bf16 %v829_v13, %v827_v12 }
 0x173   :  { %v948_v17 = vpack.c.bf16 %v830_v15, %v828_v14  ;;  %v542_v18 = vpop.f32.mrb[20].mxu0 }
 0x174   :  { %v543_v19 = vadd.f32 %v542_v18, %v2444_v42  ;;  %v544_v20 = vpop.f32.mrb[21].mxu0 }
 0x175   :  { %v545_v21 = vadd.f32 %v544_v20, %v2448_v43  ;;  %v546_v22 = vpop.f32.mrb[22].mxu0  ;;  %1279 = vmatprep.mubr.bf16.mxu1 %v948_v17 }
 0x176   :  { %v547_v23 = vadd.f32 %v546_v22, %v2444_v42  ;;  %v548_v24 = vpop.f32.mrb[23].mxu0  ;;  %1280 = vmatmul.mubr.bf16.gmra.mrb[16].mxu1 %v947_v16  ;;  %v831_v26 = vmax.f32 %v543_v19, 0.0 }
 0x177   :  { %v549_v25 = vadd.f32 %v548_v24, %v2448_v43  ;;  %v832_v28 = vmax.f32 %v545_v21, 0.0 }
 0x178   :  { %v833_v27 = vmax.f32 %v547_v23, 0.0 }
 0x179   :  { %v834_v29 = vmax.f32 %v549_v25, 0.0 }
 0x17a   :  { %v949_v30 = vpack.c.bf16 %v833_v27, %v831_v26 }
 0x17b   :  { %v950_v31 = vpack.c.bf16 %v834_v29, %v832_v28  ;;  %v552_v33 = vpop.f32.mrb[24].mxu0 }
 0x17c   :  { %v553_v34 = vadd.f32 %v552_v33, %v2444_v42  ;;  %v554_v35 = vpop.f32.mrb[25].mxu0 }
 0x17d   :  { %v555_v36 = vadd.f32 %v554_v35, %v2448_v43  ;;  %v556_v37 = vpop.f32.mrb[26].mxu0  ;;  %1289 = vmatprep.mubr.bf16.mxu1 %v950_v31 }
 0x17e   :  { %v557_v39 = vadd.f32 %v556_v37, %v2444_v42  ;;  %v558_v41 = vpop.f32.mrb[27].mxu0  ;;  %1290 = vmatmul.mubr.bf16.gmra.mrb[20].mxu1 %v949_v30  ;;  %v835_v45 = vmax.f32 %v553_v34, 0.0 }
 0x17f   :  { %v559_v44 = vadd.f32 %v558_v41, %v2448_v43  ;;  %v836_v47 = vmax.f32 %v555_v36, 0.0 }
 0x180   :  { %v837_v46 = vmax.f32 %v557_v39, 0.0 }
 0x181   :  { %v838_v48 = vmax.f32 %v559_v44, 0.0 }
 0x182   :  { %v951_v49 = vpack.c.bf16 %v837_v46, %v835_v45 }
 0x183   :  { %v952_v50 = vpack.c.bf16 %v838_v48, %v836_v47  ;;  %v562_v51 = vpop.f32.mrb[28].mxu0 }
 0x184   :  { %v563_v52 = vadd.f32 %v562_v51, %v2444_v42  ;;  %v564_v53 = vpop.f32.mrb[29].mxu0 }
 0x185   :  { %v565_v54 = vadd.f32 %v564_v53, %v2448_v43  ;;  %v566_v55 = vpop.f32.mrb[30].mxu0  ;;  %1299 = vmatprep.mubr.bf16.mxu1 %v952_v50 }
 0x186   :  { %v567_v56 = vadd.f32 %v566_v55, %v2444_v42  ;;  %v568_v57 = vpop.f32.mrb[31].mxu0  ;;  %1300 = vmatmul.mubr.bf16.gmra.mrb[24].mxu1 %v951_v49  ;;  %v839_v59 = vmax.f32 %v563_v52, 0.0 }
 0x187   :  { %v569_v58 = vadd.f32 %v568_v57, %v2448_v43  ;;  %v840_v61 = vmax.f32 %v565_v54, 0.0 }
 0x188   :  { %v841_v60 = vmax.f32 %v567_v56, 0.0 }
 0x189   :  { %v842_v62 = vmax.f32 %v569_v58, 0.0 }
 0x18a   :  { %v953_v63 = vpack.c.bf16 %v841_v60, %v839_v59 }
 0x18b   :  { %v954_v0 = vpack.c.bf16 %v842_v62, %v840_v61  ;;  %v572_v1 = vpop.f32.mrb[32].mxu0 }
 0x18c   :  { %v573_v2 = vadd.f32 %v572_v1, %v2444_v42  ;;  %v574_v3 = vpop.f32.mrb[33].mxu0 }
 0x18d   :  { %v575_v4 = vadd.f32 %v574_v3, %v2448_v43  ;;  %v576_v5 = vpop.f32.mrb[34].mxu0  ;;  %1309 = vmatprep.mubr.bf16.mxu1 %v954_v0 }
 0x18e   :  { %v577_v6 = vadd.f32 %v576_v5, %v2444_v42  ;;  %v578_v7 = vpop.f32.mrb[35].mxu0  ;;  %1310 = vmatmul.mubr.bf16.gmra.mrb[28].mxu1 %v953_v63  ;;  %v843_v9 = vmax.f32 %v573_v2, 0.0 }
 0x18f   :  { %v579_v8 = vadd.f32 %v578_v7, %v2448_v43  ;;  %v844_v11 = vmax.f32 %v575_v4, 0.0 }
 0x190   :  { %v845_v10 = vmax.f32 %v577_v6, 0.0 }
 0x191   :  { %v846_v12 = vmax.f32 %v579_v8, 0.0 }
 0x192   :  { %v955_v13 = vpack.c.bf16 %v845_v10, %v843_v9 }
 0x193   :  { %v956_v14 = vpack.c.bf16 %v846_v12, %v844_v11  ;;  %v582_v15 = vpop.f32.mrb[36].mxu0 }
 0x194   :  { %v583_v16 = vadd.f32 %v582_v15, %v2444_v42  ;;  %v584_v17 = vpop.f32.mrb[37].mxu0 }
 0x195   :  { %v585_v18 = vadd.f32 %v584_v17, %v2448_v43  ;;  %v586_v19 = vpop.f32.mrb[38].mxu0  ;;  %1319 = vmatprep.mubr.bf16.mxu1 %v956_v14 }
 0x196   :  { %v587_v20 = vadd.f32 %v586_v19, %v2444_v42  ;;  %v588_v21 = vpop.f32.mrb[39].mxu0  ;;  %1320 = vmatmul.mubr.bf16.gmra.mrb[32].mxu1 %v955_v13  ;;  %v847_v23 = vmax.f32 %v583_v16, 0.0 }
 0x197   :  { %v589_v22 = vadd.f32 %v588_v21, %v2448_v43  ;;  %v848_v25 = vmax.f32 %v585_v18, 0.0 }
 0x198   :  { %v849_v24 = vmax.f32 %v587_v20, 0.0 }
 0x199   :  { %v850_v26 = vmax.f32 %v589_v22, 0.0 }
 0x19a   :  { %v957_v27 = vpack.c.bf16 %v849_v24, %v847_v23 }
 0x19b   :  { %v958_v28 = vpack.c.bf16 %v850_v26, %v848_v25  ;;  %v592_v29 = vpop.f32.mrb[40].mxu0 }
 0x19c   :  { %v593_v30 = vadd.f32 %v592_v29, %v2444_v42  ;;  %v594_v31 = vpop.f32.mrb[41].mxu0 }
 0x19d   :  { %v595_v33 = vadd.f32 %v594_v31, %v2448_v43  ;;  %v596_v34 = vpop.f32.mrb[42].mxu0  ;;  %1329 = vmatprep.mubr.bf16.mxu1 %v958_v28 }
 0x19e   :  { %v597_v35 = vadd.f32 %v596_v34, %v2444_v42  ;;  %v598_v36 = vpop.f32.mrb[43].mxu0  ;;  %1330 = vmatmul.mubr.bf16.gmra.mrb[36].mxu1 %v957_v27  ;;  %v851_v39 = vmax.f32 %v593_v30, 0.0 }
 0x19f   :  { %v599_v37 = vadd.f32 %v598_v36, %v2448_v43  ;;  %v852_v44 = vmax.f32 %v595_v33, 0.0 }
 0x1a0   :  { %v853_v41 = vmax.f32 %v597_v35, 0.0 }
 0x1a1   :  { %v854_v45 = vmax.f32 %v599_v37, 0.0 }
 0x1a2   :  { %v959_v46 = vpack.c.bf16 %v853_v41, %v851_v39 }
 0x1a3   :  { %v960_v47 = vpack.c.bf16 %v854_v45, %v852_v44  ;;  %v602_v48 = vpop.f32.mrb[44].mxu0 }
 0x1a4   :  { %v603_v49 = vadd.f32 %v602_v48, %v2444_v42  ;;  %v604_v50 = vpop.f32.mrb[45].mxu0 }
 0x1a5   :  { %v605_v51 = vadd.f32 %v604_v50, %v2448_v43  ;;  %v606_v52 = vpop.f32.mrb[46].mxu0  ;;  %1339 = vmatprep.mubr.bf16.mxu1 %v960_v47 }
 0x1a6   :  { %v607_v53 = vadd.f32 %v606_v52, %v2444_v42  ;;  %v608_v54 = vpop.f32.mrb[47].mxu0  ;;  %1340 = vmatmul.mubr.bf16.gmra.mrb[40].mxu1 %v959_v46  ;;  %v855_v56 = vmax.f32 %v603_v49, 0.0 }
 0x1a7   :  { %v609_v55 = vadd.f32 %v608_v54, %v2448_v43  ;;  %v856_v58 = vmax.f32 %v605_v51, 0.0 }
 0x1a8   :  { %v857_v57 = vmax.f32 %v607_v53, 0.0 }
 0x1a9   :  { %v858_v59 = vmax.f32 %v609_v55, 0.0 }
 0x1aa   :  { %v961_v60 = vpack.c.bf16 %v857_v57, %v855_v56 }
 0x1ab   :  { %v962_v61 = vpack.c.bf16 %v858_v59, %v856_v58  ;;  %v612_v62 = vpop.f32.mrb[48].mxu0 }
 0x1ac   :  { %v613_v63 = vadd.f32 %v612_v62, %v2444_v42  ;;  %v614_v0 = vpop.f32.mrb[49].mxu0 }
 0x1ad   :  { %v615_v1 = vadd.f32 %v614_v0, %v2448_v43  ;;  %v616_v2 = vpop.f32.mrb[50].mxu0  ;;  %1349 = vmatprep.mubr.bf16.mxu1 %v962_v61 }
 0x1ae   :  { %v617_v3 = vadd.f32 %v616_v2, %v2444_v42  ;;  %v618_v4 = vpop.f32.mrb[51].mxu0  ;;  %1350 = vmatmul.mubr.bf16.gmra.mrb[44].mxu1 %v961_v60  ;;  %v859_v6 = vmax.f32 %v613_v63, 0.0 }
 0x1af   :  { %v619_v5 = vadd.f32 %v618_v4, %v2448_v43  ;;  %v860_v8 = vmax.f32 %v615_v1, 0.0 }
 0x1b0   :  { %v861_v7 = vmax.f32 %v617_v3, 0.0 }
 0x1b1   :  { %v862_v9 = vmax.f32 %v619_v5, 0.0 }
 0x1b2   :  { %v963_v10 = vpack.c.bf16 %v861_v7, %v859_v6 }
 0x1b3   :  { %v964_v11 = vpack.c.bf16 %v862_v9, %v860_v8  ;;  %v622_v12 = vpop.f32.mrb[52].mxu0 }
 0x1b4   :  { %v623_v13 = vadd.f32 %v622_v12, %v2444_v42  ;;  %v624_v14 = vpop.f32.mrb[53].mxu0 }
 0x1b5   :  { %v625_v15 = vadd.f32 %v624_v14, %v2448_v43  ;;  %v626_v16 = vpop.f32.mrb[54].mxu0  ;;  %1359 = vmatprep.mubr.bf16.mxu1 %v964_v11 }
 0x1b6   :  { %v627_v17 = vadd.f32 %v626_v16, %v2444_v42  ;;  %v628_v18 = vpop.f32.mrb[55].mxu0  ;;  %1360 = vmatmul.mubr.bf16.gmra.mrb[48].mxu1 %v963_v10  ;;  %v863_v20 = vmax.f32 %v623_v13, 0.0 }
 0x1b7   :  { %v629_v19 = vadd.f32 %v628_v18, %v2448_v43  ;;  %v864_v22 = vmax.f32 %v625_v15, 0.0 }
 0x1b8   :  { %v865_v21 = vmax.f32 %v627_v17, 0.0 }
 0x1b9   :  { %v866_v23 = vmax.f32 %v629_v19, 0.0 }
 0x1ba   :  { %v965_v24 = vpack.c.bf16 %v865_v21, %v863_v20 }
 0x1bb   :  { %v966_v25 = vpack.c.bf16 %v866_v23, %v864_v22  ;;  %v632_v26 = vpop.f32.mrb[56].mxu0 }
 0x1bc   :  { %v633_v27 = vadd.f32 %v632_v26, %v2444_v42  ;;  %v634_v28 = vpop.f32.mrb[57].mxu0 }
 0x1bd   :  { %v635_v29 = vadd.f32 %v634_v28, %v2448_v43  ;;  %v636_v30 = vpop.f32.mrb[58].mxu0  ;;  %1369 = vmatprep.mubr.bf16.mxu1 %v966_v25 }
 0x1be   :  { %v637_v31 = vadd.f32 %v636_v30, %v2444_v42  ;;  %v638_v33 = vpop.f32.mrb[59].mxu0  ;;  %1370 = vmatmul.mubr.bf16.gmra.mrb[52].mxu1 %v965_v24  ;;  %v867_v35 = vmax.f32 %v633_v27, 0.0 }
 0x1bf   :  { %v639_v34 = vadd.f32 %v638_v33, %v2448_v43  ;;  %v868_v37 = vmax.f32 %v635_v29, 0.0 }
 0x1c0   :  { %v869_v36 = vmax.f32 %v637_v31, 0.0 }
 0x1c1   :  { %v870_v39 = vmax.f32 %v639_v34, 0.0 }
 0x1c2   :  { %v967_v41 = vpack.c.bf16 %v869_v36, %v867_v35 }
 0x1c3   :  { %v968_v44 = vpack.c.bf16 %v870_v39, %v868_v37  ;;  %v642_v45 = vpop.f32.mrb[60].mxu0 }
 0x1c4   :  { %v643_v46 = vadd.f32 %v642_v45, %v2444_v42  ;;  %v644_v47 = vpop.f32.mrb[61].mxu0 }
 0x1c5   :  { %v645_v48 = vadd.f32 %v644_v47, %v2448_v43  ;;  %v646_v49 = vpop.f32.mrb[62].mxu0  ;;  %1379 = vmatprep.mubr.bf16.mxu1 %v968_v44 }
 0x1c6   :  { %v647_v50 = vadd.f32 %v646_v49, %v2444_v42  ;;  %v648_v51 = vpop.f32.mrb[63].mxu0  ;;  %1380 = vmatmul.mubr.bf16.gmra.mrb[56].mxu1 %v967_v41  ;;  %v871_v53 = vmax.f32 %v643_v46, 0.0 }
 0x1c7   :  { %v649_v52 = vadd.f32 %v648_v51, %v2448_v43  ;;  %v872_v55 = vmax.f32 %v645_v48, 0.0 }
 0x1c8   :  { %v873_v54 = vmax.f32 %v647_v50, 0.0 }
 0x1c9   :  { %v874_v56 = vmax.f32 %v649_v52, 0.0 }
 0x1ca   :  { %v969_v57 = vpack.c.bf16 %v873_v54, %v871_v53 }
 0x1cb   :  { %v970_v58 = vpack.c.bf16 %v874_v56, %v872_v55  ;;  %v652_v59 = vpop.f32.mrb[64].mxu0 }
 0x1cc   :  { %v653_v60 = vadd.f32 %v652_v59, %v2444_v42  ;;  %v654_v61 = vpop.f32.mrb[65].mxu0 }
 0x1cd   :  { %v655_v62 = vadd.f32 %v654_v61, %v2448_v43  ;;  %v656_v63 = vpop.f32.mrb[66].mxu0  ;;  %1389 = vmatprep.mubr.bf16.mxu1 %v970_v58 }
 0x1ce   :  { %v657_v0 = vadd.f32 %v656_v63, %v2444_v42  ;;  %v658_v1 = vpop.f32.mrb[67].mxu0  ;;  %1390 = vmatmul.mubr.bf16.gmra.mrb[60].mxu1 %v969_v57  ;;  %v875_v3 = vmax.f32 %v653_v60, 0.0 }
 0x1cf   :  { %v659_v2 = vadd.f32 %v658_v1, %v2448_v43  ;;  %v876_v5 = vmax.f32 %v655_v62, 0.0 }
 0x1d0   :  { %v877_v4 = vmax.f32 %v657_v0, 0.0 }
 0x1d1   :  { %v878_v6 = vmax.f32 %v659_v2, 0.0 }
 0x1d2   :  { %v971_v7 = vpack.c.bf16 %v877_v4, %v875_v3 }
 0x1d3   :  { %v972_v8 = vpack.c.bf16 %v878_v6, %v876_v5  ;;  %v662_v9 = vpop.f32.mrb[68].mxu0 }
 0x1d4   :  { %v663_v10 = vadd.f32 %v662_v9, %v2444_v42  ;;  %v664_v11 = vpop.f32.mrb[69].mxu0 }
 0x1d5   :  { %v665_v12 = vadd.f32 %v664_v11, %v2448_v43  ;;  %v666_v13 = vpop.f32.mrb[70].mxu0  ;;  %1399 = vmatprep.mubr.bf16.mxu1 %v972_v8 }
 0x1d6   :  { %v667_v14 = vadd.f32 %v666_v13, %v2444_v42  ;;  %v668_v15 = vpop.f32.mrb[71].mxu0  ;;  %1400 = vmatmul.mubr.bf16.gmra.mrb[64].mxu1 %v971_v7  ;;  %v879_v17 = vmax.f32 %v663_v10, 0.0 }
 0x1d7   :  { %v669_v16 = vadd.f32 %v668_v15, %v2448_v43  ;;  %v880_v19 = vmax.f32 %v665_v12, 0.0 }
 0x1d8   :  { %v881_v18 = vmax.f32 %v667_v14, 0.0 }
 0x1d9   :  { %v882_v20 = vmax.f32 %v669_v16, 0.0 }
 0x1da   :  { %v973_v21 = vpack.c.bf16 %v881_v18, %v879_v17 }
 0x1db   :  { %v974_v22 = vpack.c.bf16 %v882_v20, %v880_v19  ;;  %v672_v23 = vpop.f32.mrb[72].mxu0 }
 0x1dc   :  { %v673_v24 = vadd.f32 %v672_v23, %v2444_v42  ;;  %v674_v25 = vpop.f32.mrb[73].mxu0 }
 0x1dd   :  { %v675_v26 = vadd.f32 %v674_v25, %v2448_v43  ;;  %v676_v27 = vpop.f32.mrb[74].mxu0  ;;  %1409 = vmatprep.mubr.bf16.mxu1 %v974_v22 }
 0x1de   :  { %v677_v28 = vadd.f32 %v676_v27, %v2444_v42  ;;  %v678_v29 = vpop.f32.mrb[75].mxu0  ;;  %1410 = vmatmul.mubr.bf16.gmra.mrb[68].mxu1 %v973_v21  ;;  %v883_v31 = vmax.f32 %v673_v24, 0.0 }
 0x1df   :  { %v679_v30 = vadd.f32 %v678_v29, %v2448_v43  ;;  %v884_v34 = vmax.f32 %v675_v26, 0.0 }
 0x1e0   :  { %v885_v33 = vmax.f32 %v677_v28, 0.0 }
 0x1e1   :  { %v886_v35 = vmax.f32 %v679_v30, 0.0 }
 0x1e2   :  { %v975_v36 = vpack.c.bf16 %v885_v33, %v883_v31 }
 0x1e3   :  { %v976_v37 = vpack.c.bf16 %v886_v35, %v884_v34  ;;  %v682_v39 = vpop.f32.mrb[76].mxu0 }
 0x1e4   :  { %v683_v41 = vadd.f32 %v682_v39, %v2444_v42  ;;  %v684_v44 = vpop.f32.mrb[77].mxu0 }
 0x1e5   :  { %v685_v45 = vadd.f32 %v684_v44, %v2448_v43  ;;  %v686_v46 = vpop.f32.mrb[78].mxu0  ;;  %1419 = vmatprep.mubr.bf16.mxu1 %v976_v37 }
 0x1e6   :  { %v687_v47 = vadd.f32 %v686_v46, %v2444_v42  ;;  %v688_v48 = vpop.f32.mrb[79].mxu0  ;;  %1420 = vmatmul.mubr.bf16.gmra.mrb[72].mxu1 %v975_v36  ;;  %v887_v50 = vmax.f32 %v683_v41, 0.0 }
 0x1e7   :  { %v689_v49 = vadd.f32 %v688_v48, %v2448_v43  ;;  %v888_v52 = vmax.f32 %v685_v45, 0.0 }
 0x1e8   :  { %v889_v51 = vmax.f32 %v687_v47, 0.0 }
 0x1e9   :  { %v890_v53 = vmax.f32 %v689_v49, 0.0 }
 0x1ea   :  { %v977_v54 = vpack.c.bf16 %v889_v51, %v887_v50 }
 0x1eb   :  { %v978_v55 = vpack.c.bf16 %v890_v53, %v888_v52  ;;  %v692_v56 = vpop.f32.mrb[80].mxu0 }
 0x1ec   :  { %v693_v57 = vadd.f32 %v692_v56, %v2444_v42  ;;  %v694_v58 = vpop.f32.mrb[81].mxu0 }
 0x1ed   :  { %v695_v59 = vadd.f32 %v694_v58, %v2448_v43  ;;  %v696_v60 = vpop.f32.mrb[82].mxu0  ;;  %1429 = vmatprep.mubr.bf16.mxu1 %v978_v55 }
 0x1ee   :  { %v697_v61 = vadd.f32 %v696_v60, %v2444_v42  ;;  %v698_v62 = vpop.f32.mrb[83].mxu0  ;;  %1430 = vmatmul.mubr.bf16.gmra.mrb[76].mxu1 %v977_v54  ;;  %v891_v0 = vmax.f32 %v693_v57, 0.0 }
 0x1ef   :  { %v699_v63 = vadd.f32 %v698_v62, %v2448_v43  ;;  %v892_v2 = vmax.f32 %v695_v59, 0.0 }
 0x1f0   :  { %v893_v1 = vmax.f32 %v697_v61, 0.0 }
 0x1f1   :  { %v894_v3 = vmax.f32 %v699_v63, 0.0 }
 0x1f2   :  { %v979_v4 = vpack.c.bf16 %v893_v1, %v891_v0 }
 0x1f3   :  { %v980_v5 = vpack.c.bf16 %v894_v3, %v892_v2  ;;  %v702_v6 = vpop.f32.mrb[84].mxu0 }
 0x1f4   :  { %v703_v7 = vadd.f32 %v702_v6, %v2444_v42  ;;  %v704_v8 = vpop.f32.mrb[85].mxu0 }
 0x1f5   :  { %v705_v9 = vadd.f32 %v704_v8, %v2448_v43  ;;  %v706_v10 = vpop.f32.mrb[86].mxu0  ;;  %1439 = vmatprep.mubr.bf16.mxu1 %v980_v5 }
 0x1f6   :  { %v707_v11 = vadd.f32 %v706_v10, %v2444_v42  ;;  %v708_v12 = vpop.f32.mrb[87].mxu0  ;;  %1440 = vmatmul.mubr.bf16.gmra.mrb[80].mxu1 %v979_v4  ;;  %v895_v14 = vmax.f32 %v703_v7, 0.0 }
 0x1f7   :  { %v709_v13 = vadd.f32 %v708_v12, %v2448_v43  ;;  %v896_v16 = vmax.f32 %v705_v9, 0.0 }
 0x1f8   :  { %v897_v15 = vmax.f32 %v707_v11, 0.0 }
 0x1f9   :  { %v898_v17 = vmax.f32 %v709_v13, 0.0 }
 0x1fa   :  { %v981_v18 = vpack.c.bf16 %v897_v15, %v895_v14 }
 0x1fb   :  { %v982_v19 = vpack.c.bf16 %v898_v17, %v896_v16  ;;  %v712_v20 = vpop.f32.mrb[88].mxu0 }
 0x1fc   :  { %v713_v21 = vadd.f32 %v712_v20, %v2444_v42  ;;  %v714_v22 = vpop.f32.mrb[89].mxu0 }
 0x1fd   :  { %v715_v23 = vadd.f32 %v714_v22, %v2448_v43  ;;  %v716_v24 = vpop.f32.mrb[90].mxu0  ;;  %1449 = vmatprep.mubr.bf16.mxu1 %v982_v19 }
 0x1fe   :  { %v717_v25 = vadd.f32 %v716_v24, %v2444_v42  ;;  %v718_v26 = vpop.f32.mrb[91].mxu0  ;;  %1450 = vmatmul.mubr.bf16.gmra.mrb[84].mxu1 %v981_v18  ;;  %v899_v28 = vmax.f32 %v713_v21, 0.0 }
 0x1ff   :  { %v719_v27 = vadd.f32 %v718_v26, %v2448_v43  ;;  %v900_v30 = vmax.f32 %v715_v23, 0.0 }
 0x200   :  { %v901_v29 = vmax.f32 %v717_v25, 0.0 }
 0x201   :  { %v902_v31 = vmax.f32 %v719_v27, 0.0 }
 0x202   :  { %v983_v33 = vpack.c.bf16 %v901_v29, %v899_v28 }
 0x203   :  { %v984_v34 = vpack.c.bf16 %v902_v31, %v900_v30  ;;  %v722_v35 = vpop.f32.mrb[92].mxu0 }
 0x204   :  { %v723_v36 = vadd.f32 %v722_v35, %v2444_v42  ;;  %v724_v37 = vpop.f32.mrb[93].mxu0 }
 0x205   :  { %v725_v39 = vadd.f32 %v724_v37, %v2448_v43  ;;  %v726_v41 = vpop.f32.mrb[94].mxu0  ;;  %1459 = vmatprep.mubr.bf16.mxu1 %v984_v34 }
 0x206   :  { %v727_v44 = vadd.f32 %v726_v41, %v2444_v42  ;;  %v728_v45 = vpop.f32.mrb[95].mxu0  ;;  %1460 = vmatmul.mubr.bf16.gmra.mrb[88].mxu1 %v983_v33  ;;  %v903_v47 = vmax.f32 %v723_v36, 0.0  ;;  %v1035_v33 = vld [vmem:[%s2736_s4] sm:$0x3]  ;;  %s2359_s4 = smov [#allocation8]  }
 0x207   :  { %v729_v46 = vadd.f32 %v728_v45, %v2448_v43  ;;  %v904_v49 = vmax.f32 %v725_v39, 0.0  ;;  %s1949_s8 = sshll.u32 %s2359_s4, 4  ;;  %s1950_s8 = int_to_ptr.vmem [resolvable:$true] %s1949_s8 }
 0x208   :  { %v905_v48 = vmax.f32 %v727_v44, 0.0  ;;  %v2566_v44 = vrot.slane %v1035_v33, %v290_v38  ;;  %s2324_s9 = scalar_lea.vmem %s1950_s8, 16384  ;;  %p2329_p11 = scmp.lt.s32.totalorder %s1950_s8, %s1950_s8 }
 0x209   :  { %v906_v50 = vmax.f32 %v729_v46, 0.0  ;;  %v2571_v46 = vrot.slane %v1035_v33, %v294_v40  ;;  %v2135_v33 = vld [vmem:[#allocation2 + $0x28] sm:$0xff]  ;;  %p2325_p10 = scmp.ne.s32.totalorder %s1950_s8, %s2324_s9  ;;  %p2330_p12 = scmp.lt.s32.totalorder %s2324_s9, %s2324_s9 }
 0x20a   :  { %v985_v51 = vpack.c.bf16 %v905_v48, %v903_v47 }
 0x20b   :  { %v986_v52 = vpack.c.bf16 %v906_v50, %v904_v49  ;;  %v732_v53 = vpop.f32.mrb[96].mxu0  ;;  %p2331_p13 = por %p2330_p12, %p2329_p11 }
 0x20c   :  { %v733_v54 = vadd.f32 %v732_v53, %v2444_v42  ;;  %v734_v55 = vpop.f32.mrb[97].mxu0 }
 0x20d   :  { %v735_v56 = vadd.f32 %v734_v55, %v2448_v43  ;;  %v736_v57 = vpop.f32.mrb[98].mxu0  ;;  %1469 = vmatprep.mubr.bf16.mxu1 %v986_v52  ;;  %p2332_p0 = pnand %p2331_p13, %p2325_p10 }
 0x20e   :  { %v737_v58 = vadd.f32 %v736_v57, %v2444_v42  ;;  %v738_v59 = vpop.f32.mrb[99].mxu0  ;;  %1470 = vmatmul.mubr.bf16.gmra.mrb[92].mxu1 %v985_v51  ;;  %v907_v61 = vmax.f32 %v733_v54, 0.0 }
 0x20f   :  { %v739_v60 = vadd.f32 %v738_v59, %v2448_v43  ;;  %v908_v63 = vmax.f32 %v735_v56, 0.0 }
 0x210   :  { %v909_v62 = vmax.f32 %v737_v58, 0.0  ;;  %v2130_v58 = vld [vmem:[#allocation2] sm:$0xff] }
 0x211   :  { %v910_v0 = vmax.f32 %v739_v60, 0.0 }
 0x212   :  { %v987_v1 = vpack.c.bf16 %v909_v62, %v907_v61  ;;  %v2131_v62 = vld [vmem:[#allocation2 + $0x8] sm:$0xff] }
 0x213   :  { %v988_v2 = vpack.c.bf16 %v910_v0, %v908_v63  ;;  %v742_v3 = vpop.f32.mrb[100].mxu0 }
 0x214   :  { %v743_v4 = vadd.f32 %v742_v3, %v2444_v42  ;;  %v744_v5 = vpop.f32.mrb[101].mxu0 }
 0x215   :  { %v745_v6 = vadd.f32 %v744_v5, %v2448_v43  ;;  %v746_v7 = vpop.f32.mrb[102].mxu0  ;;  %1479 = vmatprep.mubr.bf16.mxu1 %v988_v2 }
 0x216   :  { %v747_v8 = vadd.f32 %v746_v7, %v2444_v42  ;;  %v748_v9 = vpop.f32.mrb[103].mxu0  ;;  %1480 = vmatmul.mubr.bf16.gmra.mrb[96].mxu1 %v987_v1  ;;  %v911_v11 = vmax.f32 %v743_v4, 0.0  ;;  %v2132_v4 = vld [vmem:[#allocation2 + $0x10] sm:$0xff] }
 0x217   :  { %v749_v10 = vadd.f32 %v748_v9, %v2448_v43  ;;  %v912_v13 = vmax.f32 %v745_v6, 0.0  ;;  %v2133_v9 = vld [vmem:[#allocation2 + $0x18] sm:$0xff] }
 0x218   :  { %v913_v12 = vmax.f32 %v747_v8, 0.0 }
 0x219   :  { %v914_v14 = vmax.f32 %v749_v10, 0.0 }
 0x21a   :  { %v989_v15 = vpack.c.bf16 %v913_v12, %v911_v11 }
 0x21b   :  { %v990_v16 = vpack.c.bf16 %v914_v14, %v912_v13  ;;  %v752_v17 = vpop.f32.mrb[104].mxu0 }
 0x21c   :  { %v753_v18 = vadd.f32 %v752_v17, %v2444_v42  ;;  %v754_v19 = vpop.f32.mrb[105].mxu0 }
 0x21d   :  { %v755_v20 = vadd.f32 %v754_v19, %v2448_v43  ;;  %v756_v21 = vpop.f32.mrb[106].mxu0  ;;  %1489 = vmatprep.mubr.bf16.mxu1 %v990_v16 }
 0x21e   :  { %v757_v22 = vadd.f32 %v756_v21, %v2444_v42  ;;  %v758_v23 = vpop.f32.mrb[107].mxu0  ;;  %1490 = vmatmul.mubr.bf16.gmra.mrb[100].mxu1 %v989_v15  ;;  %v915_v25 = vmax.f32 %v753_v18, 0.0 }
 0x21f   :  { %v759_v24 = vadd.f32 %v758_v23, %v2448_v43  ;;  %v916_v27 = vmax.f32 %v755_v20, 0.0 }
 0x220   :  { %v917_v26 = vmax.f32 %v757_v22, 0.0 }
 0x221   :  { %v918_v28 = vmax.f32 %v759_v24, 0.0 }
 0x222   :  { %v991_v29 = vpack.c.bf16 %v917_v26, %v915_v25  ;;  %v2134_v26 = vld [vmem:[#allocation2 + $0x20] sm:$0xff] }
 0x223   :  { %v992_v30 = vpack.c.bf16 %v918_v28, %v916_v27  ;;  %v762_v31 = vpop.f32.mrb[108].mxu0 }
 0x224   :  { %v763_v34 = vadd.f32 %v762_v31, %v2444_v42  ;;  %v764_v35 = vpop.f32.mrb[109].mxu0 }
 0x225   :  { %v765_v36 = vadd.f32 %v764_v35, %v2448_v43  ;;  %v766_v37 = vpop.f32.mrb[110].mxu0  ;;  %1499 = vmatprep.mubr.bf16.mxu1 %v992_v30 }
 0x226   :  { %v767_v39 = vadd.f32 %v766_v37, %v2444_v42  ;;  %v768_v41 = vpop.f32.mrb[111].mxu0  ;;  %1500 = vmatmul.mubr.bf16.gmra.mrb[104].mxu1 %v991_v29  ;;  %v919_v47 = vmax.f32 %v763_v34, 0.0 }
 0x227   :  { %v769_v45 = vadd.f32 %v768_v41, %v2448_v43  ;;  %v920_v49 = vmax.f32 %v765_v36, 0.0  ;;  %v2136_v41 = vld [vmem:[#allocation2 + $0x30] sm:$0xff] }
 0x228   :  { %v921_v48 = vmax.f32 %v767_v39, 0.0 }
 0x229   :  { %v922_v50 = vmax.f32 %v769_v45, 0.0  ;;  %v1241_v51 = vpop.f32.mrb[0].mxu1 }
 0x22a   :  { %v993_v52 = vpack.c.bf16 %v921_v48, %v919_v47  ;;  %v1242_v53 = vadd.f32 %v1241_v51, %v2566_v44  ;;  %v1243_v54 = vpop.f32.mrb[1].mxu1 }
 0x22b   :  { %v994_v55 = vpack.c.bf16 %v922_v50, %v920_v49  ;;  %v1244_v56 = vadd.f32 %v1243_v54, %v2571_v46  ;;  %v772_v38 = vpop.f32.mrb[112].mxu0  ;;  %v1245_v57 = vpop.f32.mrb[2].mxu1  ;;  %v2137_v50 = vld [vmem:[#allocation2 + $0x38] sm:$0xff] }
 0x22c   :  { %v1560_v59 = vadd.f32 %v2130_v58, %v1242_v53  ;;  %v773_v32 = vadd.f32 %v772_v38, %v2444_v42  ;;  %v1246_v40 = vadd.f32 %v1245_v57, %v2566_v44  ;;  %v774_v60 = vpop.f32.mrb[113].mxu0  ;;  %v1247_v61 = vpop.f32.mrb[3].mxu1 }
 0x22d   :  { %v1561_v63 = vadd.f32 %v2131_v62, %v1244_v56  ;;  %v775_v0 = vadd.f32 %v774_v60, %v2448_v43  ;;  %v1248_v1 = vadd.f32 %v1247_v61, %v2571_v46  ;;  %v776_v2 = vpop.f32.mrb[114].mxu0  ;;  %1509 = vmatprep.mubr.bf16.mxu1 %v994_v55 }
 0x22e   :  { %v1688_v3 = vmax.f32 %v1560_v59, 0.0  ;;  %v1562_v5 = vadd.f32 %v2132_v4, %v1246_v40  ;;  %v777_v6 = vadd.f32 %v776_v2, %v2444_v42  ;;  %v778_v7 = vpop.f32.mrb[115].mxu0  ;;  %1510 = vmatmul.mubr.bf16.gmra.mrb[108].mxu1 %v993_v52  ;;  %v923_v12 = vmax.f32 %v773_v32, 0.0 }
 0x22f   :  { %v1689_v8 = vmax.f32 %v1561_v63, 0.0  ;;  %v1563_v10 = vadd.f32 %v2133_v9, %v1248_v1  ;;  %v779_v11 = vadd.f32 %v778_v7, %v2448_v43  ;;  %v924_v15 = vmax.f32 %v775_v0, 0.0  ;;  %v2138_v0 = vld [vmem:[#allocation2 + $0x40] sm:$0xff] }
 0x230   :  { %1816 = vst [vmem:[#allocation8] sm:$0xff] %v1688_v3  ;;  %v1690_v13 = vmax.f32 %v1562_v5, 0.0  ;;  %v925_v14 = vmax.f32 %v777_v6, 0.0  ;;  %v2139_v6 = vld [vmem:[#allocation2 + $0x48] sm:$0xff] }
 0x231   :  { %1817 = vst [vmem:[#allocation8 + $0x8] sm:$0xff] %v1689_v8  ;;  %v1691_v16 = vmax.f32 %v1563_v10, 0.0  ;;  %v926_v17 = vmax.f32 %v779_v11, 0.0  ;;  %v1251_v18 = vpop.f32.mrb[4].mxu1 }
 0x232   :  { %1818 = vst [vmem:[#allocation8 + $0x10] sm:$0xff] %v1690_v13  ;;  %v995_v19 = vpack.c.bf16 %v925_v14, %v923_v12  ;;  %v1252_v20 = vadd.f32 %v1251_v18, %v2566_v44  ;;  %v1253_v21 = vpop.f32.mrb[5].mxu1  ;;  %v2140_v12 = vld [vmem:[#allocation2 + $0x50] sm:$0xff] }
 0x233   :  { %1819 = vst [vmem:[#allocation8 + $0x18] sm:$0xff] %v1691_v16  ;;  %v996_v22 = vpack.c.bf16 %v926_v17, %v924_v15  ;;  %v1254_v23 = vadd.f32 %v1253_v21, %v2571_v46  ;;  %v782_v24 = vpop.f32.mrb[116].mxu0  ;;  %v1255_v25 = vpop.f32.mrb[6].mxu1  ;;  %v2141_v17 = vld [vmem:[#allocation2 + $0x58] sm:$0xff] }
 0x234   :  { %v1564_v27 = vadd.f32 %v2134_v26, %v1252_v20  ;;  %v783_v28 = vadd.f32 %v782_v24, %v2444_v42  ;;  %v1256_v29 = vadd.f32 %v1255_v25, %v2566_v44  ;;  %v784_v30 = vpop.f32.mrb[117].mxu0  ;;  %v1257_v31 = vpop.f32.mrb[7].mxu1 }
 0x235   :  { %v1565_v34 = vadd.f32 %v2135_v33, %v1254_v23  ;;  %v785_v35 = vadd.f32 %v784_v30, %v2448_v43  ;;  %v1258_v36 = vadd.f32 %v1257_v31, %v2571_v46  ;;  %v786_v37 = vpop.f32.mrb[118].mxu0  ;;  %1519 = vmatprep.mubr.bf16.mxu1 %v996_v22 }
 0x236   :  { %v1692_v39 = vmax.f32 %v1564_v27, 0.0  ;;  %v1566_v45 = vadd.f32 %v2136_v41, %v1256_v29  ;;  %v787_v47 = vadd.f32 %v786_v37, %v2444_v42  ;;  %v788_v48 = vpop.f32.mrb[119].mxu0  ;;  %1520 = vmatmul.mubr.bf16.gmra.mrb[112].mxu1 %v995_v19  ;;  %v927_v53 = vmax.f32 %v783_v28, 0.0 }
 0x237   :  { %v1693_v49 = vmax.f32 %v1565_v34, 0.0  ;;  %v1567_v51 = vadd.f32 %v2137_v50, %v1258_v36  ;;  %v789_v52 = vadd.f32 %v788_v48, %v2448_v43  ;;  %v928_v56 = vmax.f32 %v785_v35, 0.0  ;;  %v2142_v35 = vld [vmem:[#allocation2 + $0x60] sm:$0xff] }
 0x238   :  { %1820 = vst [vmem:[#allocation8 + $0x20] sm:$0xff] %v1692_v39  ;;  %v1694_v54 = vmax.f32 %v1566_v45, 0.0  ;;  %v929_v55 = vmax.f32 %v787_v47, 0.0  ;;  %v2143_v47 = vld [vmem:[#allocation2 + $0x68] sm:$0xff] }
 0x239   :  { %1821 = vst [vmem:[#allocation8 + $0x28] sm:$0xff] %v1693_v49  ;;  %v1695_v38 = vmax.f32 %v1567_v51, 0.0  ;;  %v930_v57 = vmax.f32 %v789_v52, 0.0  ;;  %v1261_v58 = vpop.f32.mrb[8].mxu1 }
 0x23a   :  { %1822 = vst [vmem:[#allocation8 + $0x30] sm:$0xff] %v1694_v54  ;;  %v997_v59 = vpack.c.bf16 %v929_v55, %v927_v53  ;;  %v1262_v32 = vadd.f32 %v1261_v58, %v2566_v44  ;;  %v1263_v40 = vpop.f32.mrb[9].mxu1  ;;  %v2144_v53 = vld [vmem:[#allocation2 + $0x70] sm:$0xff] }
 0x23b   :  { %1823 = vst [vmem:[#allocation8 + $0x38] sm:$0xff] %v1695_v38  ;;  %v998_v60 = vpack.c.bf16 %v930_v57, %v928_v56  ;;  %v1264_v61 = vadd.f32 %v1263_v40, %v2571_v46  ;;  %v792_v62 = vpop.f32.mrb[120].mxu0  ;;  %v1265_v63 = vpop.f32.mrb[10].mxu1  ;;  %v2145_v57 = vld [vmem:[#allocation2 + $0x78] sm:$0xff] }
 0x23c   :  { %v1568_v1 = vadd.f32 %v2138_v0, %v1262_v32  ;;  %v793_v2 = vadd.f32 %v792_v62, %v2444_v42  ;;  %v1266_v3 = vadd.f32 %v1265_v63, %v2566_v44  ;;  %v794_v4 = vpop.f32.mrb[121].mxu0  ;;  %v1267_v5 = vpop.f32.mrb[11].mxu1 }
 0x23d   :  { %v1569_v7 = vadd.f32 %v2139_v6, %v1264_v61  ;;  %v795_v8 = vadd.f32 %v794_v4, %v2448_v43  ;;  %v1268_v9 = vadd.f32 %v1267_v5, %v2571_v46  ;;  %v796_v10 = vpop.f32.mrb[122].mxu0  ;;  %1529 = vmatprep.mubr.bf16.mxu1 %v998_v60 }
 0x23e   :  { %v1696_v11 = vmax.f32 %v1568_v1, 0.0  ;;  %v1570_v13 = vadd.f32 %v2140_v12, %v1266_v3  ;;  %v797_v14 = vadd.f32 %v796_v10, %v2444_v42  ;;  %v798_v15 = vpop.f32.mrb[123].mxu0  ;;  %1530 = vmatmul.mubr.bf16.gmra.mrb[116].mxu1 %v997_v59  ;;  %v931_v20 = vmax.f32 %v793_v2, 0.0 }
 0x23f   :  { %v1697_v16 = vmax.f32 %v1569_v7, 0.0  ;;  %v1571_v18 = vadd.f32 %v2141_v17, %v1268_v9  ;;  %v799_v19 = vadd.f32 %v798_v15, %v2448_v43  ;;  %v932_v23 = vmax.f32 %v795_v8, 0.0  ;;  %v2147_v9 = vld [vmem:[#allocation2 + $0x88] sm:$0xff] }
 0x240   :  { %1824 = vst [vmem:[#allocation8 + $0x40] sm:$0xff] %v1696_v11  ;;  %v1698_v21 = vmax.f32 %v1570_v13, 0.0  ;;  %v933_v22 = vmax.f32 %v797_v14, 0.0  ;;  %v2148_v13 = vld [vmem:[#allocation2 + $0x90] sm:$0xff] }
 0x241   :  { %1825 = vst [vmem:[#allocation8 + $0x48] sm:$0xff] %v1697_v16  ;;  %v1699_v24 = vmax.f32 %v1571_v18, 0.0  ;;  %v934_v25 = vmax.f32 %v799_v19, 0.0  ;;  %v1271_v26 = vpop.f32.mrb[12].mxu1  ;;  %v2149_v16 = vld [vmem:[#allocation2 + $0x98] sm:$0xff] }
 0x242   :  { %1826 = vst [vmem:[#allocation8 + $0x50] sm:$0xff] %v1698_v21  ;;  %v999_v27 = vpack.c.bf16 %v933_v22, %v931_v20  ;;  %v1272_v28 = vadd.f32 %v1271_v26, %v2566_v44  ;;  %v1273_v29 = vpop.f32.mrb[13].mxu1 }
 0x243   :  { %1827 = vst [vmem:[#allocation8 + $0x58] sm:$0xff] %v1699_v24  ;;  %v1000_v30 = vpack.c.bf16 %v934_v25, %v932_v23  ;;  %v1274_v31 = vadd.f32 %v1273_v29, %v2571_v46  ;;  %v802_v33 = vpop.f32.mrb[124].mxu0  ;;  %v1275_v34 = vpop.f32.mrb[14].mxu1  ;;  %v2150_v25 = vld [vmem:[#allocation2 + $0xa0] sm:$0xff]  ;;  %v2151_v29 = vld [vmem:[#allocation2 + $0xa8] sm:$0xff] }
 0x244   :  { %v1572_v36 = vadd.f32 %v2142_v35, %v1272_v28  ;;  %v803_v37 = vadd.f32 %v802_v33, %v2444_v42  ;;  %v1276_v39 = vadd.f32 %v1275_v34, %v2566_v44  ;;  %v804_v41 = vpop.f32.mrb[125].mxu0  ;;  %v1277_v45 = vpop.f32.mrb[15].mxu1  ;;  %v2152_v34 = vld [vmem:[#allocation2 + $0xb0] sm:$0xff] }
 0x245   :  { %v1573_v48 = vadd.f32 %v2143_v47, %v1274_v31  ;;  %v805_v49 = vadd.f32 %v804_v41, %v2448_v43  ;;  %v1278_v50 = vadd.f32 %v1277_v45, %v2571_v46  ;;  %v806_v51 = vpop.f32.mrb[126].mxu0  ;;  %1539 = vmatprep.mubr.bf16.mxu1 %v1000_v30 }
 0x246   :  { %v1700_v52 = vmax.f32 %v1572_v36, 0.0  ;;  %v1574_v54 = vadd.f32 %v2144_v53, %v1276_v39  ;;  %v807_v55 = vadd.f32 %v806_v51, %v2444_v42  ;;  %v808_v56 = vpop.f32.mrb[127].mxu0  ;;  %1540 = vmatmul.mubr.bf16.gmra.mrb[120].mxu1 %v999_v27  ;;  %v935_v32 = vmax.f32 %v803_v37, 0.0  ;;  %v2153_v37 = vld [vmem:[#allocation2 + $0xb8] sm:$0xff] }
 0x247   :  { %v1701_v38 = vmax.f32 %v1573_v48, 0.0  ;;  %v1575_v58 = vadd.f32 %v2145_v57, %v1278_v50  ;;  %v809_v59 = vadd.f32 %v808_v56, %v2448_v43  ;;  %v936_v61 = vmax.f32 %v805_v49, 0.0  ;;  %v2146_v43 = vld [vmem:[#allocation2 + $0x80] sm:$0xff]  ;;  %v2155_v56 = vld [vmem:[#allocation2 + $0xc8] sm:$0xff] }
 0x248   :  { %1828 = vst [vmem:[#allocation8 + $0x60] sm:$0xff] %v1700_v52  ;;  %v1702_v40 = vmax.f32 %v1574_v54, 0.0  ;;  %v937_v60 = vmax.f32 %v807_v55, 0.0  ;;  %v2154_v52 = vld [vmem:[#allocation2 + $0xc0] sm:$0xff] }
 0x249   :  { %1829 = vst [vmem:[#allocation8 + $0x68] sm:$0xff] %v1701_v38  ;;  %v1703_v62 = vmax.f32 %v1575_v58, 0.0  ;;  %v938_v63 = vmax.f32 %v809_v59, 0.0  ;;  %v1281_v0 = vpop.f32.mrb[16].mxu1  ;;  %v2156_v59 = vld [vmem:[#allocation2 + $0xd0] sm:$0xff] }
 0x24a   :  { %1830 = vst [vmem:[#allocation8 + $0x70] sm:$0xff] %v1702_v40  ;;  %v1001_v1 = vpack.c.bf16 %v937_v60, %v935_v32  ;;  %v1282_v42 = vadd.f32 %v1281_v0, %v2566_v44  ;;  %v1283_v2 = vpop.f32.mrb[17].mxu1  ;;  %v2157_v60 = vld [vmem:[#allocation2 + $0xd8] sm:$0xff] }
 0x24b   :  { %1831 = vst [vmem:[#allocation8 + $0x78] sm:$0xff] %v1703_v62  ;;  %v1002_v3 = vpack.c.bf16 %v938_v63, %v936_v61  ;;  %v1284_v4 = vadd.f32 %v1283_v2, %v2571_v46  ;;  %v1285_v5 = vpop.f32.mrb[18].mxu1 }
 0x24c   :  { %v1576_v6 = vadd.f32 %v2146_v43, %v1282_v42  ;;  %v1286_v7 = vadd.f32 %v1285_v5, %v2566_v44  ;;  %v1287_v8 = vpop.f32.mrb[19].mxu1 }
 0x24d   :  { %v1577_v10 = vadd.f32 %v2147_v9, %v1284_v4  ;;  %v1288_v11 = vadd.f32 %v1287_v8, %v2571_v46  ;;  %1549 = vmatprep.mubr.bf16.mxu1 %v1002_v3  ;;  %v2158_v4 = vld [vmem:[#allocation2 + $0xe0] sm:$0xff] }
 0x24e   :  { %v1704_v12 = vmax.f32 %v1576_v6, 0.0  ;;  %v1578_v14 = vadd.f32 %v2148_v13, %v1286_v7  ;;  %1550 = vmatmul.mubr.bf16.gmra.mrb[124].mxu1 %v1001_v1  ;;  %v2159_v7 = vld [vmem:[#allocation2 + $0xe8] sm:$0xff] }
 0x24f   :  { %v1705_v15 = vmax.f32 %v1577_v10, 0.0  ;;  %v1579_v17 = vadd.f32 %v2149_v16, %v1288_v11  ;;  %v2160_v11 = vld [vmem:[#allocation2 + $0xf0] sm:$0xff] }
 0x250   :  { %1832 = vst [vmem:[#allocation8 + $0x80] sm:$0xff] %v1704_v12  ;;  %v1706_v18 = vmax.f32 %v1578_v14, 0.0  ;;  %v2161_v14 = vld [vmem:[#allocation2 + $0xf8] sm:$0xff] }
 0x251   :  { %1833 = vst [vmem:[#allocation8 + $0x88] sm:$0xff] %v1705_v15  ;;  %v1707_v19 = vmax.f32 %v1579_v17, 0.0  ;;  %v1291_v20 = vpop.f32.mrb[20].mxu1 }
 0x252   :  { %1834 = vst [vmem:[#allocation8 + $0x90] sm:$0xff] %v1706_v18  ;;  %v1292_v21 = vadd.f32 %v1291_v20, %v2566_v44  ;;  %v1293_v22 = vpop.f32.mrb[21].mxu1 }
 0x253   :  { %1835 = vst [vmem:[#allocation8 + $0x98] sm:$0xff] %v1707_v19  ;;  %v1294_v23 = vadd.f32 %v1293_v22, %v2571_v46  ;;  %v1295_v24 = vpop.f32.mrb[22].mxu1 }
 0x254   :  { %v1580_v26 = vadd.f32 %v2150_v25, %v1292_v21  ;;  %v1296_v27 = vadd.f32 %v1295_v24, %v2566_v44  ;;  %v1297_v28 = vpop.f32.mrb[23].mxu1 }
 0x255   :  { %v1581_v30 = vadd.f32 %v2151_v29, %v1294_v23  ;;  %v1298_v31 = vadd.f32 %v1297_v28, %v2571_v46  ;;  %v2162_v23 = vld [vmem:[#allocation2 + $0x100] sm:$0xff] }
 0x256   :  { %v1708_v33 = vmax.f32 %v1580_v26, 0.0  ;;  %v1582_v35 = vadd.f32 %v2152_v34, %v1296_v27  ;;  %v2163_v27 = vld [vmem:[#allocation2 + $0x108] sm:$0xff] }
 0x257   :  { %v1709_v36 = vmax.f32 %v1581_v30, 0.0  ;;  %v1583_v39 = vadd.f32 %v2153_v37, %v1298_v31  ;;  %v2164_v31 = vld [vmem:[#allocation2 + $0x110] sm:$0xff] }
 0x258   :  { %1836 = vst [vmem:[#allocation8 + $0xa0] sm:$0xff] %v1708_v33  ;;  %v1710_v41 = vmax.f32 %v1582_v35, 0.0  ;;  %v2165_v35 = vld [vmem:[#allocation2 + $0x118] sm:$0xff] }
 0x259   :  { %1837 = vst [vmem:[#allocation8 + $0xa8] sm:$0xff] %v1709_v36  ;;  %v1711_v45 = vmax.f32 %v1583_v39, 0.0  ;;  %v1301_v47 = vpop.f32.mrb[24].mxu1 }
 0x25a   :  { %1838 = vst [vmem:[#allocation8 + $0xb0] sm:$0xff] %v1710_v41  ;;  %v1302_v48 = vadd.f32 %v1301_v47, %v2566_v44  ;;  %v1303_v49 = vpop.f32.mrb[25].mxu1 }
 0x25b   :  { %1839 = vst [vmem:[#allocation8 + $0xb8] sm:$0xff] %v1711_v45  ;;  %v1304_v50 = vadd.f32 %v1303_v49, %v2571_v46  ;;  %v1305_v51 = vpop.f32.mrb[26].mxu1 }
 0x25c   :  { %v1584_v53 = vadd.f32 %v2154_v52, %v1302_v48  ;;  %v1306_v54 = vadd.f32 %v1305_v51, %v2566_v44  ;;  %v1307_v55 = vpop.f32.mrb[27].mxu1 }
 0x25d   :  { %v1585_v38 = vadd.f32 %v2155_v56, %v1304_v50  ;;  %v1308_v57 = vadd.f32 %v1307_v55, %v2571_v46  ;;  %v2166_v50 = vld [vmem:[#allocation2 + $0x120] sm:$0xff] }
 0x25e   :  { %v1712_v58 = vmax.f32 %v1584_v53, 0.0  ;;  %v1586_v32 = vadd.f32 %v2156_v59, %v1306_v54  ;;  %v2167_v54 = vld [vmem:[#allocation2 + $0x128] sm:$0xff] }
 0x25f   :  { %v1713_v40 = vmax.f32 %v1585_v38, 0.0  ;;  %v1587_v61 = vadd.f32 %v2157_v60, %v1308_v57  ;;  %v2168_v57 = vld [vmem:[#allocation2 + $0x130] sm:$0xff] }
 0x260   :  { %1840 = vst [vmem:[#allocation8 + $0xc0] sm:$0xff] %v1712_v58  ;;  %v1714_v62 = vmax.f32 %v1586_v32, 0.0  ;;  %v2169_v32 = vld [vmem:[#allocation2 + $0x138] sm:$0xff] }
 0x261   :  { %1841 = vst [vmem:[#allocation8 + $0xc8] sm:$0xff] %v1713_v40  ;;  %v1715_v63 = vmax.f32 %v1587_v61, 0.0  ;;  %v1311_v0 = vpop.f32.mrb[28].mxu1 }
 0x262   :  { %1842 = vst [vmem:[#allocation8 + $0xd0] sm:$0xff] %v1714_v62  ;;  %v1312_v1 = vadd.f32 %v1311_v0, %v2566_v44  ;;  %v1313_v42 = vpop.f32.mrb[29].mxu1 }
 0x263   :  { %1843 = vst [vmem:[#allocation8 + $0xd8] sm:$0xff] %v1715_v63  ;;  %v1314_v2 = vadd.f32 %v1313_v42, %v2571_v46  ;;  %v1315_v3 = vpop.f32.mrb[30].mxu1 }
 0x264   :  { %v1588_v5 = vadd.f32 %v2158_v4, %v1312_v1  ;;  %v1316_v43 = vadd.f32 %v1315_v3, %v2566_v44  ;;  %v1317_v6 = vpop.f32.mrb[31].mxu1 }
 0x265   :  { %v1589_v8 = vadd.f32 %v2159_v7, %v1314_v2  ;;  %v1318_v9 = vadd.f32 %v1317_v6, %v2571_v46  ;;  %v2170_v2 = vld [vmem:[#allocation2 + $0x140] sm:$0xff] }
 0x266   :  { %v1716_v10 = vmax.f32 %v1588_v5, 0.0  ;;  %v1590_v12 = vadd.f32 %v2160_v11, %v1316_v43  ;;  %v2171_v43 = vld [vmem:[#allocation2 + $0x148] sm:$0xff] }
 0x267   :  { %v1717_v13 = vmax.f32 %v1589_v8, 0.0  ;;  %v1591_v15 = vadd.f32 %v2161_v14, %v1318_v9  ;;  %v2172_v9 = vld [vmem:[#allocation2 + $0x150] sm:$0xff] }
 0x268   :  { %1844 = vst [vmem:[#allocation8 + $0xe0] sm:$0xff] %v1716_v10  ;;  %v1718_v16 = vmax.f32 %v1590_v12, 0.0  ;;  %v2173_v12 = vld [vmem:[#allocation2 + $0x158] sm:$0xff] }
 0x269   :  { %1845 = vst [vmem:[#allocation8 + $0xe8] sm:$0xff] %v1717_v13  ;;  %v1719_v17 = vmax.f32 %v1591_v15, 0.0  ;;  %v1321_v18 = vpop.f32.mrb[32].mxu1 }
 0x26a   :  { %1846 = vst [vmem:[#allocation8 + $0xf0] sm:$0xff] %v1718_v16  ;;  %v1322_v19 = vadd.f32 %v1321_v18, %v2566_v44  ;;  %v1323_v20 = vpop.f32.mrb[33].mxu1 }
 0x26b   :  { %1847 = vst [vmem:[#allocation8 + $0xf8] sm:$0xff] %v1719_v17  ;;  %v1324_v21 = vadd.f32 %v1323_v20, %v2571_v46  ;;  %v1325_v22 = vpop.f32.mrb[34].mxu1 }
 0x26c   :  { %v1592_v24 = vadd.f32 %v2162_v23, %v1322_v19  ;;  %v1326_v25 = vadd.f32 %v1325_v22, %v2566_v44  ;;  %v1327_v26 = vpop.f32.mrb[35].mxu1 }
 0x26d   :  { %v1593_v28 = vadd.f32 %v2163_v27, %v1324_v21  ;;  %v1328_v29 = vadd.f32 %v1327_v26, %v2571_v46  ;;  %v2174_v21 = vld [vmem:[#allocation2 + $0x160] sm:$0xff] }
 0x26e   :  { %v1720_v30 = vmax.f32 %v1592_v24, 0.0  ;;  %v1594_v33 = vadd.f32 %v2164_v31, %v1326_v25  ;;  %v2175_v25 = vld [vmem:[#allocation2 + $0x168] sm:$0xff] }
 0x26f   :  { %v1721_v34 = vmax.f32 %v1593_v28, 0.0  ;;  %v1595_v36 = vadd.f32 %v2165_v35, %v1328_v29  ;;  %v2176_v29 = vld [vmem:[#allocation2 + $0x170] sm:$0xff] }
 0x270   :  { %1848 = vst [vmem:[#allocation8 + $0x100] sm:$0xff] %v1720_v30  ;;  %v1722_v37 = vmax.f32 %v1594_v33, 0.0  ;;  %v2177_v33 = vld [vmem:[#allocation2 + $0x178] sm:$0xff] }
 0x271   :  { %1849 = vst [vmem:[#allocation8 + $0x108] sm:$0xff] %v1721_v34  ;;  %v1723_v39 = vmax.f32 %v1595_v36, 0.0  ;;  %v1331_v41 = vpop.f32.mrb[36].mxu1 }
 0x272   :  { %1850 = vst [vmem:[#allocation8 + $0x110] sm:$0xff] %v1722_v37  ;;  %v1332_v45 = vadd.f32 %v1331_v41, %v2566_v44  ;;  %v1333_v47 = vpop.f32.mrb[37].mxu1 }
 0x273   :  { %1851 = vst [vmem:[#allocation8 + $0x118] sm:$0xff] %v1723_v39  ;;  %v1334_v48 = vadd.f32 %v1333_v47, %v2571_v46  ;;  %v1335_v49 = vpop.f32.mrb[38].mxu1 }
 0x274   :  { %v1596_v51 = vadd.f32 %v2166_v50, %v1332_v45  ;;  %v1336_v52 = vadd.f32 %v1335_v49, %v2566_v44  ;;  %v1337_v53 = vpop.f32.mrb[39].mxu1 }
 0x275   :  { %v1597_v55 = vadd.f32 %v2167_v54, %v1334_v48  ;;  %v1338_v56 = vadd.f32 %v1337_v53, %v2571_v46  ;;  %v2178_v48 = vld [vmem:[#allocation2 + $0x180] sm:$0xff] }
 0x276   :  { %v1724_v38 = vmax.f32 %v1596_v51, 0.0  ;;  %v1598_v58 = vadd.f32 %v2168_v57, %v1336_v52  ;;  %v2179_v52 = vld [vmem:[#allocation2 + $0x188] sm:$0xff] }
 0x277   :  { %v1725_v59 = vmax.f32 %v1597_v55, 0.0  ;;  %v1599_v40 = vadd.f32 %v2169_v32, %v1338_v56  ;;  %v2180_v56 = vld [vmem:[#allocation2 + $0x190] sm:$0xff] }
 0x278   :  { %1852 = vst [vmem:[#allocation8 + $0x120] sm:$0xff] %v1724_v38  ;;  %v1726_v60 = vmax.f32 %v1598_v58, 0.0  ;;  %v2181_v58 = vld [vmem:[#allocation2 + $0x198] sm:$0xff] }
 0x279   :  { %1853 = vst [vmem:[#allocation8 + $0x128] sm:$0xff] %v1725_v59  ;;  %v1727_v61 = vmax.f32 %v1599_v40, 0.0  ;;  %v1341_v62 = vpop.f32.mrb[40].mxu1 }
 0x27a   :  { %1854 = vst [vmem:[#allocation8 + $0x130] sm:$0xff] %v1726_v60  ;;  %v1342_v63 = vadd.f32 %v1341_v62, %v2566_v44  ;;  %v1343_v0 = vpop.f32.mrb[41].mxu1 }
 0x27b   :  { %1855 = vst [vmem:[#allocation8 + $0x138] sm:$0xff] %v1727_v61  ;;  %v1344_v1 = vadd.f32 %v1343_v0, %v2571_v46  ;;  %v1345_v42 = vpop.f32.mrb[42].mxu1 }
 0x27c   :  { %v1600_v3 = vadd.f32 %v2170_v2, %v1342_v63  ;;  %v1346_v4 = vadd.f32 %v1345_v42, %v2566_v44  ;;  %v1347_v5 = vpop.f32.mrb[43].mxu1 }
 0x27d   :  { %v1601_v6 = vadd.f32 %v2171_v43, %v1344_v1  ;;  %v1348_v7 = vadd.f32 %v1347_v5, %v2571_v46  ;;  %v2182_v1 = vld [vmem:[#allocation2 + $0x1a0] sm:$0xff] }
 0x27e   :  { %v1728_v8 = vmax.f32 %v1600_v3, 0.0  ;;  %v1602_v10 = vadd.f32 %v2172_v9, %v1346_v4  ;;  %v2183_v4 = vld [vmem:[#allocation2 + $0x1a8] sm:$0xff] }
 0x27f   :  { %v1729_v11 = vmax.f32 %v1601_v6, 0.0  ;;  %v1603_v13 = vadd.f32 %v2173_v12, %v1348_v7  ;;  %v2184_v7 = vld [vmem:[#allocation2 + $0x1b0] sm:$0xff] }
 0x280   :  { %1856 = vst [vmem:[#allocation8 + $0x140] sm:$0xff] %v1728_v8  ;;  %v1730_v14 = vmax.f32 %v1602_v10, 0.0  ;;  %v2185_v10 = vld [vmem:[#allocation2 + $0x1b8] sm:$0xff] }
 0x281   :  { %1857 = vst [vmem:[#allocation8 + $0x148] sm:$0xff] %v1729_v11  ;;  %v1731_v15 = vmax.f32 %v1603_v13, 0.0  ;;  %v1351_v16 = vpop.f32.mrb[44].mxu1 }
 0x282   :  { %1858 = vst [vmem:[#allocation8 + $0x150] sm:$0xff] %v1730_v14  ;;  %v1352_v17 = vadd.f32 %v1351_v16, %v2566_v44  ;;  %v1353_v18 = vpop.f32.mrb[45].mxu1 }
 0x283   :  { %1859 = vst [vmem:[#allocation8 + $0x158] sm:$0xff] %v1731_v15  ;;  %v1354_v19 = vadd.f32 %v1353_v18, %v2571_v46  ;;  %v1355_v20 = vpop.f32.mrb[46].mxu1 }
 0x284   :  { %v1604_v22 = vadd.f32 %v2174_v21, %v1352_v17  ;;  %v1356_v23 = vadd.f32 %v1355_v20, %v2566_v44  ;;  %v1357_v24 = vpop.f32.mrb[47].mxu1 }
 0x285   :  { %v1605_v26 = vadd.f32 %v2175_v25, %v1354_v19  ;;  %v1358_v27 = vadd.f32 %v1357_v24, %v2571_v46  ;;  %v2186_v19 = vld [vmem:[#allocation2 + $0x1c0] sm:$0xff] }
 0x286   :  { %v1732_v28 = vmax.f32 %v1604_v22, 0.0  ;;  %v1606_v30 = vadd.f32 %v2176_v29, %v1356_v23  ;;  %v2187_v23 = vld [vmem:[#allocation2 + $0x1c8] sm:$0xff] }
 0x287   :  { %v1733_v31 = vmax.f32 %v1605_v26, 0.0  ;;  %v1607_v34 = vadd.f32 %v2177_v33, %v1358_v27  ;;  %v2188_v27 = vld [vmem:[#allocation2 + $0x1d0] sm:$0xff] }
 0x288   :  { %1860 = vst [vmem:[#allocation8 + $0x160] sm:$0xff] %v1732_v28  ;;  %v1734_v35 = vmax.f32 %v1606_v30, 0.0  ;;  %v2189_v30 = vld [vmem:[#allocation2 + $0x1d8] sm:$0xff] }
 0x289   :  { %1861 = vst [vmem:[#allocation8 + $0x168] sm:$0xff] %v1733_v31  ;;  %v1735_v36 = vmax.f32 %v1607_v34, 0.0  ;;  %v1361_v37 = vpop.f32.mrb[48].mxu1 }
 0x28a   :  { %1862 = vst [vmem:[#allocation8 + $0x170] sm:$0xff] %v1734_v35  ;;  %v1362_v39 = vadd.f32 %v1361_v37, %v2566_v44  ;;  %v1363_v41 = vpop.f32.mrb[49].mxu1 }
 0x28b   :  { %1863 = vst [vmem:[#allocation8 + $0x178] sm:$0xff] %v1735_v36  ;;  %v1364_v45 = vadd.f32 %v1363_v41, %v2571_v46  ;;  %v1365_v47 = vpop.f32.mrb[50].mxu1 }
 0x28c   :  { %v1608_v49 = vadd.f32 %v2178_v48, %v1362_v39  ;;  %v1366_v50 = vadd.f32 %v1365_v47, %v2566_v44  ;;  %v1367_v51 = vpop.f32.mrb[51].mxu1 }
 0x28d   :  { %v1609_v53 = vadd.f32 %v2179_v52, %v1364_v45  ;;  %v1368_v54 = vadd.f32 %v1367_v51, %v2571_v46  ;;  %v2190_v45 = vld [vmem:[#allocation2 + $0x1e0] sm:$0xff] }
 0x28e   :  { %v1736_v55 = vmax.f32 %v1608_v49, 0.0  ;;  %v1610_v38 = vadd.f32 %v2180_v56, %v1366_v50  ;;  %v2191_v50 = vld [vmem:[#allocation2 + $0x1e8] sm:$0xff] }
 0x28f   :  { %v1737_v57 = vmax.f32 %v1609_v53, 0.0  ;;  %v1611_v59 = vadd.f32 %v2181_v58, %v1368_v54  ;;  %v2192_v54 = vld [vmem:[#allocation2 + $0x1f0] sm:$0xff] }
 0x290   :  { %1864 = vst [vmem:[#allocation8 + $0x180] sm:$0xff] %v1736_v55  ;;  %v1738_v32 = vmax.f32 %v1610_v38, 0.0  ;;  %v2193_v38 = vld [vmem:[#allocation2 + $0x1f8] sm:$0xff] }
 0x291   :  { %1865 = vst [vmem:[#allocation8 + $0x188] sm:$0xff] %v1737_v57  ;;  %v1739_v40 = vmax.f32 %v1611_v59, 0.0  ;;  %v1371_v60 = vpop.f32.mrb[52].mxu1 }
 0x292   :  { %1866 = vst [vmem:[#allocation8 + $0x190] sm:$0xff] %v1738_v32  ;;  %v1372_v61 = vadd.f32 %v1371_v60, %v2566_v44  ;;  %v1373_v62 = vpop.f32.mrb[53].mxu1 }
 0x293   :  { %1867 = vst [vmem:[#allocation8 + $0x198] sm:$0xff] %v1739_v40  ;;  %v1374_v63 = vadd.f32 %v1373_v62, %v2571_v46  ;;  %v1375_v0 = vpop.f32.mrb[54].mxu1 }
 0x294   :  { %v1612_v42 = vadd.f32 %v2182_v1, %v1372_v61  ;;  %v1376_v2 = vadd.f32 %v1375_v0, %v2566_v44  ;;  %v1377_v3 = vpop.f32.mrb[55].mxu1 }
 0x295   :  { %v1613_v5 = vadd.f32 %v2183_v4, %v1374_v63  ;;  %v1378_v43 = vadd.f32 %v1377_v3, %v2571_v46  ;;  %v2194_v63 = vld [vmem:[#allocation2 + $0x200] sm:$0xff] }
 0x296   :  { %v1740_v6 = vmax.f32 %v1612_v42, 0.0  ;;  %v1614_v8 = vadd.f32 %v2184_v7, %v1376_v2  ;;  %v2195_v2 = vld [vmem:[#allocation2 + $0x208] sm:$0xff] }
 0x297   :  { %v1741_v9 = vmax.f32 %v1613_v5, 0.0  ;;  %v1615_v11 = vadd.f32 %v2185_v10, %v1378_v43  ;;  %v2196_v43 = vld [vmem:[#allocation2 + $0x210] sm:$0xff] }
 0x298   :  { %1868 = vst [vmem:[#allocation8 + $0x1a0] sm:$0xff] %v1740_v6  ;;  %v1742_v12 = vmax.f32 %v1614_v8, 0.0  ;;  %v2197_v8 = vld [vmem:[#allocation2 + $0x218] sm:$0xff] }
 0x299   :  { %1869 = vst [vmem:[#allocation8 + $0x1a8] sm:$0xff] %v1741_v9  ;;  %v1743_v13 = vmax.f32 %v1615_v11, 0.0  ;;  %v1381_v14 = vpop.f32.mrb[56].mxu1 }
 0x29a   :  { %1870 = vst [vmem:[#allocation8 + $0x1b0] sm:$0xff] %v1742_v12  ;;  %v1382_v15 = vadd.f32 %v1381_v14, %v2566_v44  ;;  %v1383_v16 = vpop.f32.mrb[57].mxu1 }
 0x29b   :  { %1871 = vst [vmem:[#allocation8 + $0x1b8] sm:$0xff] %v1743_v13  ;;  %v1384_v17 = vadd.f32 %v1383_v16, %v2571_v46  ;;  %v1385_v18 = vpop.f32.mrb[58].mxu1 }
 0x29c   :  { %v1616_v20 = vadd.f32 %v2186_v19, %v1382_v15  ;;  %v1386_v21 = vadd.f32 %v1385_v18, %v2566_v44  ;;  %v1387_v22 = vpop.f32.mrb[59].mxu1 }
 0x29d   :  { %v1617_v24 = vadd.f32 %v2187_v23, %v1384_v17  ;;  %v1388_v25 = vadd.f32 %v1387_v22, %v2571_v46  ;;  %v2198_v17 = vld [vmem:[#allocation2 + $0x220] sm:$0xff] }
 0x29e   :  { %v1744_v26 = vmax.f32 %v1616_v20, 0.0  ;;  %v1618_v28 = vadd.f32 %v2188_v27, %v1386_v21  ;;  %v2199_v21 = vld [vmem:[#allocation2 + $0x228] sm:$0xff] }
 0x29f   :  { %v1745_v29 = vmax.f32 %v1617_v24, 0.0  ;;  %v1619_v31 = vadd.f32 %v2189_v30, %v1388_v25  ;;  %v2200_v25 = vld [vmem:[#allocation2 + $0x230] sm:$0xff] }
 0x2a0   :  { %1872 = vst [vmem:[#allocation8 + $0x1c0] sm:$0xff] %v1744_v26  ;;  %v1746_v33 = vmax.f32 %v1618_v28, 0.0  ;;  %v2201_v28 = vld [vmem:[#allocation2 + $0x238] sm:$0xff] }
 0x2a1   :  { %1873 = vst [vmem:[#allocation8 + $0x1c8] sm:$0xff] %v1745_v29  ;;  %v1747_v34 = vmax.f32 %v1619_v31, 0.0  ;;  %v1391_v35 = vpop.f32.mrb[60].mxu1 }
 0x2a2   :  { %1874 = vst [vmem:[#allocation8 + $0x1d0] sm:$0xff] %v1746_v33  ;;  %v1392_v36 = vadd.f32 %v1391_v35, %v2566_v44  ;;  %v1393_v37 = vpop.f32.mrb[61].mxu1 }
 0x2a3   :  { %1875 = vst [vmem:[#allocation8 + $0x1d8] sm:$0xff] %v1747_v34  ;;  %v1394_v39 = vadd.f32 %v1393_v37, %v2571_v46  ;;  %v1395_v41 = vpop.f32.mrb[62].mxu1 }
 0x2a4   :  { %v1620_v47 = vadd.f32 %v2190_v45, %v1392_v36  ;;  %v1396_v48 = vadd.f32 %v1395_v41, %v2566_v44  ;;  %v1397_v49 = vpop.f32.mrb[63].mxu1 }
 0x2a5   :  { %v1621_v51 = vadd.f32 %v2191_v50, %v1394_v39  ;;  %v1398_v52 = vadd.f32 %v1397_v49, %v2571_v46  ;;  %v2202_v39 = vld [vmem:[#allocation2 + $0x240] sm:$0xff] }
 0x2a6   :  { %v1748_v53 = vmax.f32 %v1620_v47, 0.0  ;;  %v1622_v55 = vadd.f32 %v2192_v54, %v1396_v48  ;;  %v2203_v48 = vld [vmem:[#allocation2 + $0x248] sm:$0xff] }
 0x2a7   :  { %v1749_v56 = vmax.f32 %v1621_v51, 0.0  ;;  %v1623_v57 = vadd.f32 %v2193_v38, %v1398_v52  ;;  %v2204_v52 = vld [vmem:[#allocation2 + $0x250] sm:$0xff] }
 0x2a8   :  { %1876 = vst [vmem:[#allocation8 + $0x1e0] sm:$0xff] %v1748_v53  ;;  %v1750_v58 = vmax.f32 %v1622_v55, 0.0  ;;  %v2205_v55 = vld [vmem:[#allocation2 + $0x258] sm:$0xff] }
 0x2a9   :  { %1877 = vst [vmem:[#allocation8 + $0x1e8] sm:$0xff] %v1749_v56  ;;  %v1751_v59 = vmax.f32 %v1623_v57, 0.0  ;;  %v1401_v32 = vpop.f32.mrb[64].mxu1 }
 0x2aa   :  { %1878 = vst [vmem:[#allocation8 + $0x1f0] sm:$0xff] %v1750_v58  ;;  %v1402_v40 = vadd.f32 %v1401_v32, %v2566_v44  ;;  %v1403_v60 = vpop.f32.mrb[65].mxu1 }
 0x2ab   :  { %1879 = vst [vmem:[#allocation8 + $0x1f8] sm:$0xff] %v1751_v59  ;;  %v1404_v61 = vadd.f32 %v1403_v60, %v2571_v46  ;;  %v1405_v62 = vpop.f32.mrb[66].mxu1 }
 0x2ac   :  { %v1624_v0 = vadd.f32 %v2194_v63, %v1402_v40  ;;  %v1406_v1 = vadd.f32 %v1405_v62, %v2566_v44  ;;  %v1407_v42 = vpop.f32.mrb[67].mxu1 }
 0x2ad   :  { %v1625_v3 = vadd.f32 %v2195_v2, %v1404_v61  ;;  %v1408_v4 = vadd.f32 %v1407_v42, %v2571_v46  ;;  %v2206_v61 = vld [vmem:[#allocation2 + $0x260] sm:$0xff] }
 0x2ae   :  { %v1752_v5 = vmax.f32 %v1624_v0, 0.0  ;;  %v1626_v6 = vadd.f32 %v2196_v43, %v1406_v1  ;;  %v2207_v1 = vld [vmem:[#allocation2 + $0x268] sm:$0xff] }
 0x2af   :  { %v1753_v7 = vmax.f32 %v1625_v3, 0.0  ;;  %v1627_v9 = vadd.f32 %v2197_v8, %v1408_v4  ;;  %v2208_v4 = vld [vmem:[#allocation2 + $0x270] sm:$0xff] }
 0x2b0   :  { %1880 = vst [vmem:[#allocation8 + $0x200] sm:$0xff] %v1752_v5  ;;  %v1754_v10 = vmax.f32 %v1626_v6, 0.0  ;;  %v2209_v6 = vld [vmem:[#allocation2 + $0x278] sm:$0xff] }
 0x2b1   :  { %1881 = vst [vmem:[#allocation8 + $0x208] sm:$0xff] %v1753_v7  ;;  %v1755_v11 = vmax.f32 %v1627_v9, 0.0  ;;  %v1411_v12 = vpop.f32.mrb[68].mxu1 }
 0x2b2   :  { %1882 = vst [vmem:[#allocation8 + $0x210] sm:$0xff] %v1754_v10  ;;  %v1412_v13 = vadd.f32 %v1411_v12, %v2566_v44  ;;  %v1413_v14 = vpop.f32.mrb[69].mxu1 }
 0x2b3   :  { %1883 = vst [vmem:[#allocation8 + $0x218] sm:$0xff] %v1755_v11  ;;  %v1414_v15 = vadd.f32 %v1413_v14, %v2571_v46  ;;  %v1415_v16 = vpop.f32.mrb[70].mxu1 }
 0x2b4   :  { %v1628_v18 = vadd.f32 %v2198_v17, %v1412_v13  ;;  %v1416_v19 = vadd.f32 %v1415_v16, %v2566_v44  ;;  %v1417_v20 = vpop.f32.mrb[71].mxu1 }
 0x2b5   :  { %v1629_v22 = vadd.f32 %v2199_v21, %v1414_v15  ;;  %v1418_v23 = vadd.f32 %v1417_v20, %v2571_v46  ;;  %v2210_v15 = vld [vmem:[#allocation2 + $0x280] sm:$0xff] }
 0x2b6   :  { %v1756_v24 = vmax.f32 %v1628_v18, 0.0  ;;  %v1630_v26 = vadd.f32 %v2200_v25, %v1416_v19  ;;  %v2211_v19 = vld [vmem:[#allocation2 + $0x288] sm:$0xff] }
 0x2b7   :  { %v1757_v27 = vmax.f32 %v1629_v22, 0.0  ;;  %v1631_v29 = vadd.f32 %v2201_v28, %v1418_v23  ;;  %v2212_v23 = vld [vmem:[#allocation2 + $0x290] sm:$0xff] }
 0x2b8   :  { %1884 = vst [vmem:[#allocation8 + $0x220] sm:$0xff] %v1756_v24  ;;  %v1758_v30 = vmax.f32 %v1630_v26, 0.0  ;;  %v2213_v26 = vld [vmem:[#allocation2 + $0x298] sm:$0xff] }
 0x2b9   :  { %1885 = vst [vmem:[#allocation8 + $0x228] sm:$0xff] %v1757_v27  ;;  %v1759_v31 = vmax.f32 %v1631_v29, 0.0  ;;  %v1421_v33 = vpop.f32.mrb[72].mxu1 }
 0x2ba   :  { %1886 = vst [vmem:[#allocation8 + $0x230] sm:$0xff] %v1758_v30  ;;  %v1422_v34 = vadd.f32 %v1421_v33, %v2566_v44  ;;  %v1423_v35 = vpop.f32.mrb[73].mxu1 }
 0x2bb   :  { %1887 = vst [vmem:[#allocation8 + $0x238] sm:$0xff] %v1759_v31  ;;  %v1424_v36 = vadd.f32 %v1423_v35, %v2571_v46  ;;  %v1425_v37 = vpop.f32.mrb[74].mxu1 }
 0x2bc   :  { %v1632_v41 = vadd.f32 %v2202_v39, %v1422_v34  ;;  %v1426_v45 = vadd.f32 %v1425_v37, %v2566_v44  ;;  %v1427_v47 = vpop.f32.mrb[75].mxu1 }
 0x2bd   :  { %v1633_v49 = vadd.f32 %v2203_v48, %v1424_v36  ;;  %v1428_v50 = vadd.f32 %v1427_v47, %v2571_v46  ;;  %v2214_v36 = vld [vmem:[#allocation2 + $0x2a0] sm:$0xff] }
 0x2be   :  { %v1760_v51 = vmax.f32 %v1632_v41, 0.0  ;;  %v1634_v53 = vadd.f32 %v2204_v52, %v1426_v45  ;;  %v2215_v45 = vld [vmem:[#allocation2 + $0x2a8] sm:$0xff] }
 0x2bf   :  { %v1761_v54 = vmax.f32 %v1633_v49, 0.0  ;;  %v1635_v56 = vadd.f32 %v2205_v55, %v1428_v50  ;;  %v2216_v50 = vld [vmem:[#allocation2 + $0x2b0] sm:$0xff] }
 0x2c0   :  { %1888 = vst [vmem:[#allocation8 + $0x240] sm:$0xff] %v1760_v51  ;;  %v1762_v38 = vmax.f32 %v1634_v53, 0.0  ;;  %v2217_v53 = vld [vmem:[#allocation2 + $0x2b8] sm:$0xff] }
 0x2c1   :  { %1889 = vst [vmem:[#allocation8 + $0x248] sm:$0xff] %v1761_v54  ;;  %v1763_v57 = vmax.f32 %v1635_v56, 0.0  ;;  %v1431_v58 = vpop.f32.mrb[76].mxu1 }
 0x2c2   :  { %1890 = vst [vmem:[#allocation8 + $0x250] sm:$0xff] %v1762_v38  ;;  %v1432_v59 = vadd.f32 %v1431_v58, %v2566_v44  ;;  %v1433_v32 = vpop.f32.mrb[77].mxu1 }
 0x2c3   :  { %1891 = vst [vmem:[#allocation8 + $0x258] sm:$0xff] %v1763_v57  ;;  %v1434_v40 = vadd.f32 %v1433_v32, %v2571_v46  ;;  %v1435_v60 = vpop.f32.mrb[78].mxu1 }
 0x2c4   :  { %v1636_v62 = vadd.f32 %v2206_v61, %v1432_v59  ;;  %v1436_v63 = vadd.f32 %v1435_v60, %v2566_v44  ;;  %v1437_v0 = vpop.f32.mrb[79].mxu1 }
 0x2c5   :  { %v1637_v42 = vadd.f32 %v2207_v1, %v1434_v40  ;;  %v1438_v2 = vadd.f32 %v1437_v0, %v2571_v46  ;;  %v2218_v40 = vld [vmem:[#allocation2 + $0x2c0] sm:$0xff] }
 0x2c6   :  { %v1764_v3 = vmax.f32 %v1636_v62, 0.0  ;;  %v1638_v5 = vadd.f32 %v2208_v4, %v1436_v63  ;;  %v2219_v63 = vld [vmem:[#allocation2 + $0x2c8] sm:$0xff] }
 0x2c7   :  { %v1765_v43 = vmax.f32 %v1637_v42, 0.0  ;;  %v1639_v7 = vadd.f32 %v2209_v6, %v1438_v2  ;;  %v2220_v2 = vld [vmem:[#allocation2 + $0x2d0] sm:$0xff] }
 0x2c8   :  { %1892 = vst [vmem:[#allocation8 + $0x260] sm:$0xff] %v1764_v3  ;;  %v1766_v8 = vmax.f32 %v1638_v5, 0.0  ;;  %v2221_v5 = vld [vmem:[#allocation2 + $0x2d8] sm:$0xff] }
 0x2c9   :  { %1893 = vst [vmem:[#allocation8 + $0x268] sm:$0xff] %v1765_v43  ;;  %v1767_v9 = vmax.f32 %v1639_v7, 0.0  ;;  %v1441_v10 = vpop.f32.mrb[80].mxu1 }
 0x2ca   :  { %1894 = vst [vmem:[#allocation8 + $0x270] sm:$0xff] %v1766_v8  ;;  %v1442_v11 = vadd.f32 %v1441_v10, %v2566_v44  ;;  %v1443_v12 = vpop.f32.mrb[81].mxu1 }
 0x2cb   :  { %1895 = vst [vmem:[#allocation8 + $0x278] sm:$0xff] %v1767_v9  ;;  %v1444_v13 = vadd.f32 %v1443_v12, %v2571_v46  ;;  %v1445_v14 = vpop.f32.mrb[82].mxu1 }
 0x2cc   :  { %v1640_v16 = vadd.f32 %v2210_v15, %v1442_v11  ;;  %v1446_v17 = vadd.f32 %v1445_v14, %v2566_v44  ;;  %v1447_v18 = vpop.f32.mrb[83].mxu1 }
 0x2cd   :  { %v1641_v20 = vadd.f32 %v2211_v19, %v1444_v13  ;;  %v1448_v21 = vadd.f32 %v1447_v18, %v2571_v46  ;;  %v2222_v13 = vld [vmem:[#allocation2 + $0x2e0] sm:$0xff] }
 0x2ce   :  { %v1768_v22 = vmax.f32 %v1640_v16, 0.0  ;;  %v1642_v24 = vadd.f32 %v2212_v23, %v1446_v17  ;;  %v2223_v17 = vld [vmem:[#allocation2 + $0x2e8] sm:$0xff] }
 0x2cf   :  { %v1769_v25 = vmax.f32 %v1641_v20, 0.0  ;;  %v1643_v27 = vadd.f32 %v2213_v26, %v1448_v21  ;;  %v2224_v21 = vld [vmem:[#allocation2 + $0x2f0] sm:$0xff] }
 0x2d0   :  { %1896 = vst [vmem:[#allocation8 + $0x280] sm:$0xff] %v1768_v22  ;;  %v1770_v28 = vmax.f32 %v1642_v24, 0.0  ;;  %v2225_v24 = vld [vmem:[#allocation2 + $0x2f8] sm:$0xff] }
 0x2d1   :  { %1897 = vst [vmem:[#allocation8 + $0x288] sm:$0xff] %v1769_v25  ;;  %v1771_v29 = vmax.f32 %v1643_v27, 0.0  ;;  %v1451_v30 = vpop.f32.mrb[84].mxu1 }
 0x2d2   :  { %1898 = vst [vmem:[#allocation8 + $0x290] sm:$0xff] %v1770_v28  ;;  %v1452_v31 = vadd.f32 %v1451_v30, %v2566_v44  ;;  %v1453_v33 = vpop.f32.mrb[85].mxu1 }
 0x2d3   :  { %1899 = vst [vmem:[#allocation8 + $0x298] sm:$0xff] %v1771_v29  ;;  %v1454_v34 = vadd.f32 %v1453_v33, %v2571_v46  ;;  %v1455_v35 = vpop.f32.mrb[86].mxu1 }
 0x2d4   :  { %v1644_v37 = vadd.f32 %v2214_v36, %v1452_v31  ;;  %v1456_v39 = vadd.f32 %v1455_v35, %v2566_v44  ;;  %v1457_v41 = vpop.f32.mrb[87].mxu1 }
 0x2d5   :  { %v1645_v47 = vadd.f32 %v2215_v45, %v1454_v34  ;;  %v1458_v48 = vadd.f32 %v1457_v41, %v2571_v46  ;;  %v2226_v34 = vld [vmem:[#allocation2 + $0x300] sm:$0xff] }
 0x2d6   :  { %v1772_v49 = vmax.f32 %v1644_v37, 0.0  ;;  %v1646_v51 = vadd.f32 %v2216_v50, %v1456_v39  ;;  %v2227_v39 = vld [vmem:[#allocation2 + $0x308] sm:$0xff] }
 0x2d7   :  { %v1773_v52 = vmax.f32 %v1645_v47, 0.0  ;;  %v1647_v54 = vadd.f32 %v2217_v53, %v1458_v48  ;;  %v2228_v48 = vld [vmem:[#allocation2 + $0x310] sm:$0xff] }
 0x2d8   :  { %1900 = vst [vmem:[#allocation8 + $0x2a0] sm:$0xff] %v1772_v49  ;;  %v1774_v55 = vmax.f32 %v1646_v51, 0.0  ;;  %v2229_v51 = vld [vmem:[#allocation2 + $0x318] sm:$0xff] }
 0x2d9   :  { %1901 = vst [vmem:[#allocation8 + $0x2a8] sm:$0xff] %v1773_v52  ;;  %v1775_v56 = vmax.f32 %v1647_v54, 0.0  ;;  %v1461_v38 = vpop.f32.mrb[88].mxu1 }
 0x2da   :  { %1902 = vst [vmem:[#allocation8 + $0x2b0] sm:$0xff] %v1774_v55  ;;  %v1462_v57 = vadd.f32 %v1461_v38, %v2566_v44  ;;  %v1463_v58 = vpop.f32.mrb[89].mxu1 }
 0x2db   :  { %1903 = vst [vmem:[#allocation8 + $0x2b8] sm:$0xff] %v1775_v56  ;;  %v1464_v59 = vadd.f32 %v1463_v58, %v2571_v46  ;;  %v1465_v32 = vpop.f32.mrb[90].mxu1 }
 0x2dc   :  { %v1648_v60 = vadd.f32 %v2218_v40, %v1462_v57  ;;  %v1466_v61 = vadd.f32 %v1465_v32, %v2566_v44  ;;  %v1467_v62 = vpop.f32.mrb[91].mxu1 }
 0x2dd   :  { %v1649_v0 = vadd.f32 %v2219_v63, %v1464_v59  ;;  %v1468_v1 = vadd.f32 %v1467_v62, %v2571_v46  ;;  %v2230_v59 = vld [vmem:[#allocation2 + $0x320] sm:$0xff] }
 0x2de   :  { %v1776_v42 = vmax.f32 %v1648_v60, 0.0  ;;  %v1650_v3 = vadd.f32 %v2220_v2, %v1466_v61  ;;  %v2231_v61 = vld [vmem:[#allocation2 + $0x328] sm:$0xff] }
 0x2df   :  { %v1777_v4 = vmax.f32 %v1649_v0, 0.0  ;;  %v1651_v43 = vadd.f32 %v2221_v5, %v1468_v1  ;;  %v2232_v1 = vld [vmem:[#allocation2 + $0x330] sm:$0xff] }
 0x2e0   :  { %1904 = vst [vmem:[#allocation8 + $0x2c0] sm:$0xff] %v1776_v42  ;;  %v1778_v6 = vmax.f32 %v1650_v3, 0.0  ;;  %v2233_v3 = vld [vmem:[#allocation2 + $0x338] sm:$0xff] }
 0x2e1   :  { %1905 = vst [vmem:[#allocation8 + $0x2c8] sm:$0xff] %v1777_v4  ;;  %v1779_v7 = vmax.f32 %v1651_v43, 0.0  ;;  %v1471_v8 = vpop.f32.mrb[92].mxu1 }
 0x2e2   :  { %1906 = vst [vmem:[#allocation8 + $0x2d0] sm:$0xff] %v1778_v6  ;;  %v1472_v9 = vadd.f32 %v1471_v8, %v2566_v44  ;;  %v1473_v10 = vpop.f32.mrb[93].mxu1 }
 0x2e3   :  { %1907 = vst [vmem:[#allocation8 + $0x2d8] sm:$0xff] %v1779_v7  ;;  %v1474_v11 = vadd.f32 %v1473_v10, %v2571_v46  ;;  %v1475_v12 = vpop.f32.mrb[94].mxu1 }
 0x2e4   :  { %v1652_v14 = vadd.f32 %v2222_v13, %v1472_v9  ;;  %v1476_v15 = vadd.f32 %v1475_v12, %v2566_v44  ;;  %v1477_v16 = vpop.f32.mrb[95].mxu1 }
 0x2e5   :  { %v1653_v18 = vadd.f32 %v2223_v17, %v1474_v11  ;;  %v1478_v19 = vadd.f32 %v1477_v16, %v2571_v46  ;;  %v2234_v11 = vld [vmem:[#allocation2 + $0x340] sm:$0xff] }
 0x2e6   :  { %v1780_v20 = vmax.f32 %v1652_v14, 0.0  ;;  %v1654_v22 = vadd.f32 %v2224_v21, %v1476_v15  ;;  %v2235_v15 = vld [vmem:[#allocation2 + $0x348] sm:$0xff] }
 0x2e7   :  { %v1781_v23 = vmax.f32 %v1653_v18, 0.0  ;;  %v1655_v25 = vadd.f32 %v2225_v24, %v1478_v19  ;;  %v2236_v19 = vld [vmem:[#allocation2 + $0x350] sm:$0xff] }
 0x2e8   :  { %1908 = vst [vmem:[#allocation8 + $0x2e0] sm:$0xff] %v1780_v20  ;;  %v1782_v26 = vmax.f32 %v1654_v22, 0.0  ;;  %v2237_v22 = vld [vmem:[#allocation2 + $0x358] sm:$0xff] }
 0x2e9   :  { %1909 = vst [vmem:[#allocation8 + $0x2e8] sm:$0xff] %v1781_v23  ;;  %v1783_v27 = vmax.f32 %v1655_v25, 0.0  ;;  %v1481_v28 = vpop.f32.mrb[96].mxu1 }
 0x2ea   :  { %1910 = vst [vmem:[#allocation8 + $0x2f0] sm:$0xff] %v1782_v26  ;;  %v1482_v29 = vadd.f32 %v1481_v28, %v2566_v44  ;;  %v1483_v30 = vpop.f32.mrb[97].mxu1 }
 0x2eb   :  { %1911 = vst [vmem:[#allocation8 + $0x2f8] sm:$0xff] %v1783_v27  ;;  %v1484_v31 = vadd.f32 %v1483_v30, %v2571_v46  ;;  %v1485_v33 = vpop.f32.mrb[98].mxu1 }
 0x2ec   :  { %v1656_v35 = vadd.f32 %v2226_v34, %v1482_v29  ;;  %v1486_v36 = vadd.f32 %v1485_v33, %v2566_v44  ;;  %v1487_v37 = vpop.f32.mrb[99].mxu1 }
 0x2ed   :  { %v1657_v41 = vadd.f32 %v2227_v39, %v1484_v31  ;;  %v1488_v45 = vadd.f32 %v1487_v37, %v2571_v46  ;;  %v2238_v31 = vld [vmem:[#allocation2 + $0x360] sm:$0xff] }
 0x2ee   :  { %v1784_v47 = vmax.f32 %v1656_v35, 0.0  ;;  %v1658_v49 = vadd.f32 %v2228_v48, %v1486_v36  ;;  %v2239_v36 = vld [vmem:[#allocation2 + $0x368] sm:$0xff] }
 0x2ef   :  { %v1785_v50 = vmax.f32 %v1657_v41, 0.0  ;;  %v1659_v52 = vadd.f32 %v2229_v51, %v1488_v45  ;;  %v2240_v45 = vld [vmem:[#allocation2 + $0x370] sm:$0xff] }
 0x2f0   :  { %1912 = vst [vmem:[#allocation8 + $0x300] sm:$0xff] %v1784_v47  ;;  %v1786_v53 = vmax.f32 %v1658_v49, 0.0  ;;  %v2241_v49 = vld [vmem:[#allocation2 + $0x378] sm:$0xff] }
 0x2f1   :  { %1913 = vst [vmem:[#allocation8 + $0x308] sm:$0xff] %v1785_v50  ;;  %v1787_v54 = vmax.f32 %v1659_v52, 0.0  ;;  %v1491_v55 = vpop.f32.mrb[100].mxu1 }
 0x2f2   :  { %1914 = vst [vmem:[#allocation8 + $0x310] sm:$0xff] %v1786_v53  ;;  %v1492_v56 = vadd.f32 %v1491_v55, %v2566_v44  ;;  %v1493_v38 = vpop.f32.mrb[101].mxu1 }
 0x2f3   :  { %1915 = vst [vmem:[#allocation8 + $0x318] sm:$0xff] %v1787_v54  ;;  %v1494_v57 = vadd.f32 %v1493_v38, %v2571_v46  ;;  %v1495_v58 = vpop.f32.mrb[102].mxu1 }
 0x2f4   :  { %v1660_v32 = vadd.f32 %v2230_v59, %v1492_v56  ;;  %v1496_v40 = vadd.f32 %v1495_v58, %v2566_v44  ;;  %v1497_v60 = vpop.f32.mrb[103].mxu1 }
 0x2f5   :  { %v1661_v62 = vadd.f32 %v2231_v61, %v1494_v57  ;;  %v1498_v63 = vadd.f32 %v1497_v60, %v2571_v46  ;;  %v2242_v57 = vld [vmem:[#allocation2 + $0x380] sm:$0xff] }
 0x2f6   :  { %v1788_v0 = vmax.f32 %v1660_v32, 0.0  ;;  %v1662_v42 = vadd.f32 %v2232_v1, %v1496_v40  ;;  %v2243_v40 = vld [vmem:[#allocation2 + $0x388] sm:$0xff] }
 0x2f7   :  { %v1789_v2 = vmax.f32 %v1661_v62, 0.0  ;;  %v1663_v4 = vadd.f32 %v2233_v3, %v1498_v63  ;;  %v2244_v63 = vld [vmem:[#allocation2 + $0x390] sm:$0xff] }
 0x2f8   :  { %1916 = vst [vmem:[#allocation8 + $0x320] sm:$0xff] %v1788_v0  ;;  %v1790_v5 = vmax.f32 %v1662_v42, 0.0  ;;  %v2245_v42 = vld [vmem:[#allocation2 + $0x398] sm:$0xff] }
 0x2f9   :  { %1917 = vst [vmem:[#allocation8 + $0x328] sm:$0xff] %v1789_v2  ;;  %v1791_v43 = vmax.f32 %v1663_v4, 0.0  ;;  %v1501_v6 = vpop.f32.mrb[104].mxu1 }
 0x2fa   :  { %1918 = vst [vmem:[#allocation8 + $0x330] sm:$0xff] %v1790_v5  ;;  %v1502_v7 = vadd.f32 %v1501_v6, %v2566_v44  ;;  %v1503_v8 = vpop.f32.mrb[105].mxu1 }
 0x2fb   :  { %1919 = vst [vmem:[#allocation8 + $0x338] sm:$0xff] %v1791_v43  ;;  %v1504_v9 = vadd.f32 %v1503_v8, %v2571_v46  ;;  %v1505_v10 = vpop.f32.mrb[106].mxu1 }
 0x2fc   :  { %v1664_v12 = vadd.f32 %v2234_v11, %v1502_v7  ;;  %v1506_v13 = vadd.f32 %v1505_v10, %v2566_v44  ;;  %v1507_v14 = vpop.f32.mrb[107].mxu1 }
 0x2fd   :  { %v1665_v16 = vadd.f32 %v2235_v15, %v1504_v9  ;;  %v1508_v17 = vadd.f32 %v1507_v14, %v2571_v46  ;;  %v2246_v9 = vld [vmem:[#allocation2 + $0x3a0] sm:$0xff] }
 0x2fe   :  { %v1792_v18 = vmax.f32 %v1664_v12, 0.0  ;;  %v1666_v20 = vadd.f32 %v2236_v19, %v1506_v13  ;;  %v2247_v13 = vld [vmem:[#allocation2 + $0x3a8] sm:$0xff] }
 0x2ff   :  { %v1793_v21 = vmax.f32 %v1665_v16, 0.0  ;;  %v1667_v23 = vadd.f32 %v2237_v22, %v1508_v17  ;;  %v2248_v17 = vld [vmem:[#allocation2 + $0x3b0] sm:$0xff] }
 0x300   :  { %1920 = vst [vmem:[#allocation8 + $0x340] sm:$0xff] %v1792_v18  ;;  %v1794_v24 = vmax.f32 %v1666_v20, 0.0  ;;  %v2249_v20 = vld [vmem:[#allocation2 + $0x3b8] sm:$0xff] }
 0x301   :  { %1921 = vst [vmem:[#allocation8 + $0x348] sm:$0xff] %v1793_v21  ;;  %v1795_v25 = vmax.f32 %v1667_v23, 0.0  ;;  %v1511_v26 = vpop.f32.mrb[108].mxu1 }
 0x302   :  { %1922 = vst [vmem:[#allocation8 + $0x350] sm:$0xff] %v1794_v24  ;;  %v1512_v27 = vadd.f32 %v1511_v26, %v2566_v44  ;;  %v1513_v28 = vpop.f32.mrb[109].mxu1 }
 0x303   :  { %1923 = vst [vmem:[#allocation8 + $0x358] sm:$0xff] %v1795_v25  ;;  %v1514_v29 = vadd.f32 %v1513_v28, %v2571_v46  ;;  %v1515_v30 = vpop.f32.mrb[110].mxu1 }
 0x304   :  { %v1668_v33 = vadd.f32 %v2238_v31, %v1512_v27  ;;  %v1516_v34 = vadd.f32 %v1515_v30, %v2566_v44  ;;  %v1517_v35 = vpop.f32.mrb[111].mxu1 }
 0x305   :  { %v1669_v37 = vadd.f32 %v2239_v36, %v1514_v29  ;;  %v1518_v39 = vadd.f32 %v1517_v35, %v2571_v46  ;;  %v2250_v29 = vld [vmem:[#allocation2 + $0x3c0] sm:$0xff] }
 0x306   :  { %v1796_v41 = vmax.f32 %v1668_v33, 0.0  ;;  %v1670_v47 = vadd.f32 %v2240_v45, %v1516_v34  ;;  %v2251_v34 = vld [vmem:[#allocation2 + $0x3c8] sm:$0xff] }
 0x307   :  { %v1797_v48 = vmax.f32 %v1669_v37, 0.0  ;;  %v1671_v50 = vadd.f32 %v2241_v49, %v1518_v39  ;;  %v2252_v39 = vld [vmem:[#allocation2 + $0x3d0] sm:$0xff] }
 0x308   :  { %1924 = vst [vmem:[#allocation8 + $0x360] sm:$0xff] %v1796_v41  ;;  %v1798_v51 = vmax.f32 %v1670_v47, 0.0  ;;  %v2253_v47 = vld [vmem:[#allocation2 + $0x3d8] sm:$0xff] }
 0x309   :  { %1925 = vst [vmem:[#allocation8 + $0x368] sm:$0xff] %v1797_v48  ;;  %v1799_v52 = vmax.f32 %v1671_v50, 0.0  ;;  %v1521_v53 = vpop.f32.mrb[112].mxu1 }
 0x30a   :  { %1926 = vst [vmem:[#allocation8 + $0x370] sm:$0xff] %v1798_v51  ;;  %v1522_v54 = vadd.f32 %v1521_v53, %v2566_v44  ;;  %v1523_v55 = vpop.f32.mrb[113].mxu1 }
 0x30b   :  { %1927 = vst [vmem:[#allocation8 + $0x378] sm:$0xff] %v1799_v52  ;;  %v1524_v56 = vadd.f32 %v1523_v55, %v2571_v46  ;;  %v1525_v38 = vpop.f32.mrb[114].mxu1 }
 0x30c   :  { %v1672_v58 = vadd.f32 %v2242_v57, %v1522_v54  ;;  %v1526_v59 = vadd.f32 %v1525_v38, %v2566_v44  ;;  %v1527_v32 = vpop.f32.mrb[115].mxu1 }
 0x30d   :  { %v1673_v60 = vadd.f32 %v2243_v40, %v1524_v56  ;;  %v1528_v61 = vadd.f32 %v1527_v32, %v2571_v46  ;;  %v2254_v56 = vld [vmem:[#allocation2 + $0x3e0] sm:$0xff] }
 0x30e   :  { %v1800_v62 = vmax.f32 %v1672_v58, 0.0  ;;  %v1674_v0 = vadd.f32 %v2244_v63, %v1526_v59  ;;  %v2255_v59 = vld [vmem:[#allocation2 + $0x3e8] sm:$0xff] }
 0x30f   :  { %v1801_v1 = vmax.f32 %v1673_v60, 0.0  ;;  %v1675_v2 = vadd.f32 %v2245_v42, %v1528_v61  ;;  %v2256_v61 = vld [vmem:[#allocation2 + $0x3f0] sm:$0xff] }
 0x310   :  { %1928 = vst [vmem:[#allocation8 + $0x380] sm:$0xff] %v1800_v62  ;;  %v1802_v3 = vmax.f32 %v1674_v0, 0.0  ;;  %v2257_v0 = vld [vmem:[#allocation2 + $0x3f8] sm:$0xff] }
 0x311   :  { %1929 = vst [vmem:[#allocation8 + $0x388] sm:$0xff] %v1801_v1  ;;  %v1803_v4 = vmax.f32 %v1675_v2, 0.0  ;;  %v1531_v5 = vpop.f32.mrb[116].mxu1 }
 0x312   :  { %1930 = vst [vmem:[#allocation8 + $0x390] sm:$0xff] %v1802_v3  ;;  %v1532_v43 = vadd.f32 %v1531_v5, %v2566_v44  ;;  %v1533_v6 = vpop.f32.mrb[117].mxu1 }
 0x313   :  { %1931 = vst [vmem:[#allocation8 + $0x398] sm:$0xff] %v1803_v4  ;;  %v1534_v7 = vadd.f32 %v1533_v6, %v2571_v46  ;;  %v1535_v8 = vpop.f32.mrb[118].mxu1 }
 0x314   :  { %v1676_v10 = vadd.f32 %v2246_v9, %v1532_v43  ;;  %v1536_v11 = vadd.f32 %v1535_v8, %v2566_v44  ;;  %v1537_v12 = vpop.f32.mrb[119].mxu1 }
 0x315   :  { %v1677_v14 = vadd.f32 %v2247_v13, %v1534_v7  ;;  %v1538_v15 = vadd.f32 %v1537_v12, %v2571_v46 }
 0x316   :  { %v1804_v16 = vmax.f32 %v1676_v10, 0.0  ;;  %v1678_v18 = vadd.f32 %v2248_v17, %v1536_v11 }
 0x317   :  { %v1805_v19 = vmax.f32 %v1677_v14, 0.0  ;;  %v1679_v21 = vadd.f32 %v2249_v20, %v1538_v15 }
 0x318   :  { %1932 = vst [vmem:[#allocation8 + $0x3a0] sm:$0xff] %v1804_v16  ;;  %v1806_v22 = vmax.f32 %v1678_v18, 0.0 }
 0x319   :  { %1933 = vst [vmem:[#allocation8 + $0x3a8] sm:$0xff] %v1805_v19  ;;  %v1807_v23 = vmax.f32 %v1679_v21, 0.0  ;;  %v1541_v24 = vpop.f32.mrb[120].mxu1 }
 0x31a   :  { %1934 = vst [vmem:[#allocation8 + $0x3b0] sm:$0xff] %v1806_v22  ;;  %v1542_v25 = vadd.f32 %v1541_v24, %v2566_v44  ;;  %v1543_v26 = vpop.f32.mrb[121].mxu1 }
 0x31b   :  { %1935 = vst [vmem:[#allocation8 + $0x3b8] sm:$0xff] %v1807_v23  ;;  %v1544_v27 = vadd.f32 %v1543_v26, %v2571_v46  ;;  %v1545_v28 = vpop.f32.mrb[122].mxu1 }
 0x31c   :  { %v1680_v30 = vadd.f32 %v2250_v29, %v1542_v25  ;;  %v1546_v31 = vadd.f32 %v1545_v28, %v2566_v44  ;;  %v1547_v33 = vpop.f32.mrb[123].mxu1 }
 0x31d   :  { %v1681_v35 = vadd.f32 %v2251_v34, %v1544_v27  ;;  %v1548_v36 = vadd.f32 %v1547_v33, %v2571_v46 }
 0x31e   :  { %v1808_v37 = vmax.f32 %v1680_v30, 0.0  ;;  %v1682_v41 = vadd.f32 %v2252_v39, %v1546_v31 }
 0x31f   :  { %v1809_v45 = vmax.f32 %v1681_v35, 0.0  ;;  %v1683_v48 = vadd.f32 %v2253_v47, %v1548_v36 }
 0x320   :  { %1936 = vst [vmem:[#allocation8 + $0x3c0] sm:$0xff] %v1808_v37  ;;  %v1810_v49 = vmax.f32 %v1682_v41, 0.0 }
 0x321   :  { %1937 = vst [vmem:[#allocation8 + $0x3c8] sm:$0xff] %v1809_v45  ;;  %v1811_v50 = vmax.f32 %v1683_v48, 0.0  ;;  %v1551_v51 = vpop.f32.mrb[124].mxu1 }
 0x322   :  { %1938 = vst [vmem:[#allocation8 + $0x3d0] sm:$0xff] %v1810_v49  ;;  %v1552_v52 = vadd.f32 %v1551_v51, %v2566_v44  ;;  %v1553_v53 = vpop.f32.mrb[125].mxu1 }
 0x323   :  { %1939 = vst [vmem:[#allocation8 + $0x3d8] sm:$0xff] %v1811_v50  ;;  %v1554_v54 = vadd.f32 %v1553_v53, %v2571_v46  ;;  %v1555_v55 = vpop.f32.mrb[126].mxu1 }
 0x324   :  { %v1684_v38 = vadd.f32 %v2254_v56, %v1552_v52  ;;  %v1556_v57 = vadd.f32 %v1555_v55, %v2566_v44  ;;  %v1557_v58 = vpop.f32.mrb[127].mxu1 }
 0x325   :  { %v1685_v32 = vadd.f32 %v2255_v59, %v1554_v54  ;;  %v1558_v40 = vadd.f32 %v1557_v58, %v2571_v46 }
 0x326   :  { %v1812_v60 = vmax.f32 %v1684_v38, 0.0  ;;  %v1686_v62 = vadd.f32 %v2256_v61, %v1556_v57 }
 0x327   :  { %v1813_v63 = vmax.f32 %v1685_v32, 0.0  ;;  %v1687_v1 = vadd.f32 %v2257_v0, %v1558_v40 }
 0x328   :  { %1940 = vst [vmem:[#allocation8 + $0x3e0] sm:$0xff] %v1812_v60  ;;  %v1814_v42 = vmax.f32 %v1686_v62, 0.0 }
 0x329   :  { %1941 = vst [vmem:[#allocation8 + $0x3e8] sm:$0xff] %v1813_v63  ;;  %v1815_v2 = vmax.f32 %v1687_v1, 0.0 }
 0x32a   :  { %1942 = vst [vmem:[#allocation8 + $0x3f0] sm:$0xff] %v1814_v42 }
 0x32b   :  { %1943 = vst [vmem:[#allocation8 + $0x3f8] sm:$0xff] %v1815_v2 }
 0x32c   :  { %2335 = shalt.err (!%p2332_p0)
}
 0x32d   :  { %s2336_s12 = scalar_lea.hbm %s2737_s5, 16384 }
 0x32e   :  { %p2337_p1 = scmp.ne.s32.totalorder %s2737_s5, %s2336_s12  ;;  %p2340_p2 = scmp.lt.u32.totalorder %s2336_s12, %s2737_s5 }
 0x330   :  { %p2342_p3 = pnand %p2340_p2, %p2337_p1 }
 0x332   :  { %2345 = shalt.err (!%p2342_p3)
}
 0x333   :  { %1955 = dma.vmem_to_hbm [thread:$0]  %s1950_s8, 16384, %s2737_s5, [#allocation4], %s2356_s1, %s2356_s1, %s2357_s17  }
 0x334   :  { %2350 = dma.done.wait [#allocation4], 16384  }
 0x335   :  { %2351 = vsyncadd [#allocation4], 4294950912 }
 0x336   :  { %1959 = vsyncpa [#allocation3], 1 }
 0x337   :  { %1960 = vsyncpa [#allocation6], 1 }
 0x338   :  { %1961 = vsyncpa [#allocation4], 1 }

</bundles_post_ra>
